<compile_context>
chip_gen: v7x
topology: tpu7x:2x2x1
jax: 0.10.0
libtpu: 0.0.40
codegen_flags: <defaults>
</compile_context>

<pallas_src>
import math
import jax
import jax.numpy as jnp
from jax.experimental import pallas as pl
from jax.experimental.pallas import tpu as pltpu

# -------------------- model hyper-parameters (small, synthetic) -------------
B, S, D = 2, 16, 32          # batch, sequence length, d_model
H = 4                        # attention heads
DH = D // H                  # head dim
DFF = 64                     # feed-forward hidden dim
NUM_LAYERS = 2
EPS = 1e-5                   # LayerNorm epsilon (PyTorch default)
BS = B * S


def _layernorm(x, gamma, beta):
    mu = jnp.mean(x, axis=-1, keepdims=True)
    var = jnp.mean((x - mu) ** 2, axis=-1, keepdims=True)
    return (x - mu) * jax.lax.rsqrt(var + EPS) * gamma + beta


# -------------------------- fused Pallas kernel ------------------------------
def encoder_stack_kernel(src_ref, pos_ref,
                         wq_ref, wk_ref, wv_ref,
                         bq_ref, bk_ref, bv_ref,
                         wo_ref, bo_ref,
                         w1_ref, b1_ref, w2_ref, b2_ref,
                         g1_ref, be1_ref, g2_ref, be2_ref,
                         out_ref, x_scr):
    layer = pl.program_id(0)

    # Layer 0: load the source activations into the resident VMEM scratch.
    @pl.when(layer == 0)
    def _():
        x_scr[...] = src_ref[...].reshape(BS, D).astype(jnp.float32)

    x = x_scr[...]                                      # (BS, D) f32, resident
    pos = pos_ref[...].reshape(BS, D).astype(jnp.float32)

    # Load this layer's parameters once into locals.
    wq = wq_ref[0]; wk = wk_ref[0]; wv = wv_ref[0]; wo = wo_ref[0]
    bq = bq_ref[0]; bk = bk_ref[0]; bv = bv_ref[0]; bo = bo_ref[0]
    w1 = w1_ref[0]; b1 = b1_ref[0]; w2 = w2_ref[0]; b2 = b2_ref[0]
    g1 = g1_ref[0]; be1 = be1_ref[0]; g2 = g2_ref[0]; be2 = be2_ref[0]

    # q = k = with_pos_embed(src, pos); batch folded into matmul rows.
    qk_in = x + pos
    q = jnp.dot(qk_in, wq, preferred_element_type=jnp.float32) + bq
    k = jnp.dot(qk_in, wk, preferred_element_type=jnp.float32) + bk
    v = jnp.dot(x,     wv, preferred_element_type=jnp.float32) + bv

    qb = q.reshape(B, S, D)
    kb = k.reshape(B, S, D)
    vb = v.reshape(B, S, D)

    # Per-head softmax attention, batched over B (flash-style einsums).
    scale = 1.0 / math.sqrt(DH)
    ctx_heads = []
    for h in range(H):
        lo = h * DH
        qh = qb[:, :, lo:lo + DH]
        kh = kb[:, :, lo:lo + DH]
        vh = vb[:, :, lo:lo + DH]
        s = jnp.einsum("bqd,bkd->bqk", qh, kh,
                       preferred_element_type=jnp.float32) * scale
        s = s - jnp.max(s, axis=-1, keepdims=True)
        p = jnp.exp(s)
        # approx reciprocal → EUP slot (idle next to exp); ~1e-4-level error.
        p = p * pl.reciprocal(jnp.sum(p, axis=-1, keepdims=True), approx=True)
        ctx_heads.append(jnp.einsum("bqk,bkd->bqd", p, vh,
                                    preferred_element_type=jnp.float32))
    ctx = jnp.concatenate(ctx_heads, axis=-1).reshape(BS, D)

    # Single out-projection matmul for all heads.
    attn = jnp.dot(ctx, wo, preferred_element_type=jnp.float32) + bo

    # residual + norm1
    x = _layernorm(x + attn, g1, be1)

    # FFN: linear1 -> ReLU -> linear2
    hdn = jnp.maximum(
        jnp.dot(x, w1, preferred_element_type=jnp.float32) + b1, 0.0)
    ff = jnp.dot(hdn, w2, preferred_element_type=jnp.float32) + b2

    # residual + norm2
    x = _layernorm(x + ff, g2, be2)

    x_scr[...] = x                                      # stays in VMEM

    # Only the last layer writes the (B, S, D) output block (one store).
    @pl.when(layer == pl.num_programs(0) - 1)
    def _():
        out_ref[...] = x.reshape(B, S, D).astype(out_ref.dtype)


# ----------------------------- wrapper ---------------------------------------
_PARAM_ORDER = ["wq", "wk", "wv", "bq", "bk", "bv", "wo", "bo",
                "w1", "b1", "w2", "b2", "g1", "be1", "g2", "be2"]


def transformer_encoder_pallas(src, pos, layer_params_list):
    """TransformerEncoder.forward: all layers fused into one pallas_call."""
    L = len(layer_params_list)
    # Stack per-layer params along a leading L axis (all 3-D after stacking).
    stacked = {k: jnp.stack([p[k] for p in layer_params_list], axis=0)
               for k in _PARAM_ORDER}
    weights = [stacked[k] for k in _PARAM_ORDER]

    act_spec = pl.BlockSpec((B, S, D), lambda l: (0, 0, 0))

    def wspec(w):
        return pl.BlockSpec((1,) + tuple(w.shape[1:]), lambda l: (l, 0, 0))

    w_specs = [wspec(w) for w in weights]

    # Advisory cost estimate (per layer): QKV + out-proj + FFN + attention.
    mm_flops = 2 * BS * (4 * D * D + 2 * D * DFF)
    attn_flops = 2 * 2 * B * H * S * S * DH
    param_bytes = 4 * (4 * D * D + 2 * D * DFF + 6 * D + DFF + 4 * D)
    cost = pl.CostEstimate(
        flops=L * (mm_flops + attn_flops),
        transcendentals=L * (B * H * S * S + B * H * S + 2 * BS),
        bytes_accessed=L * param_bytes + 3 * 4 * B * S * D,
    )

    return pl.pallas_call(
        encoder_stack_kernel,
        out_shape=jax.ShapeDtypeStruct(src.shape, src.dtype),
        grid_spec=pltpu.PrefetchScalarGridSpec(
            num_scalar_prefetch=0,
            grid=(L,),                       # sequential layer loop
            in_specs=[act_spec, act_spec] + w_specs,
            out_specs=pl.BlockSpec((B, S, D), lambda l: (0, 0, 0)),
            scratch_shapes=[pltpu.VMEM((BS, D), jnp.float32)],
        ),
        compiler_params=pltpu.CompilerParams(
            dimension_semantics=("arbitrary",),   # layer axis is a dependency
        ),
        cost_estimate=cost,
    )(src, pos, *weights)


# --------------------------- parameter init ----------------------------------
def init_layer_params(key):
    ks = jax.random.split(key, 6)
    def w(k, shape, scale=0.1):
        return jax.random.normal(k, shape, jnp.float32) * scale
    return dict(
        wq=w(ks[0], (D, D)),   bq=jnp.zeros((1, D), jnp.float32),
        wk=w(ks[1], (D, D)),   bk=jnp.zeros((1, D), jnp.float32),
        wv=w(ks[2], (D, D)),   bv=jnp.zeros((1, D), jnp.float32),
        wo=w(ks[3], (D, D)),   bo=jnp.zeros((1, D), jnp.float32),
        w1=w(ks[4], (D, DFF)), b1=jnp.zeros((1, DFF), jnp.float32),
        w2=w(ks[5], (DFF, D)), b2=jnp.zeros((1, D), jnp.float32),
        g1=jnp.ones((1, D), jnp.float32),  be1=jnp.zeros((1, D), jnp.float32),
        g2=jnp.ones((1, D), jnp.float32),  be2=jnp.zeros((1, D), jnp.float32),
    )


# ---------------------------- pure-JAX reference ------------------------------
def ref_layer(src, pos, p):
    Bv, Sv, Dv = src.shape
    qk = src + pos
    q = qk @ p["wq"] + p["bq"]
    k = qk @ p["wk"] + p["bk"]
    v = src @ p["wv"] + p["bv"]
    qh = q.reshape(Bv, Sv, H, DH)
    kh = k.reshape(Bv, Sv, H, DH)
    vh = v.reshape(Bv, Sv, H, DH)
    scores = jnp.einsum("bqhd,bkhd->bhqk", qh, kh) / math.sqrt(DH)
    pr = jax.nn.softmax(scores, axis=-1)
    o = jnp.einsum("bhqk,bkhd->bqhd", pr, vh).reshape(Bv, Sv, Dv)
    o = o @ p["wo"] + p["bo"]
    x = src + o
    x = _layernorm(x, p["g1"], p["be1"])
    ff = jnp.maximum(x @ p["w1"] + p["b1"], 0.0) @ p["w2"] + p["b2"]
    x = x + ff
    x = _layernorm(x, p["g2"], p["be2"])
    return x


def ref_encoder(src, pos, layer_params_list):
    out = src
    for p in layer_params_list:
        out = ref_layer(out, pos, p)
    return out


# --------------------------------- main ---------------------------------------
if __name__ == "__main__":
    key = jax.random.PRNGKey(0)
    k_src, k_pos, k_par = jax.random.split(key, 3)
    src = jax.random.normal(k_src, (B, S, D), jnp.float32)
    pos = jax.random.normal(k_pos, (B, S, D), jnp.float32)

    # _get_clones -> all layers share the same (deep-copied) initial params
    shared_params = init_layer_params(k_par)
    layer_params_list = [shared_params for _ in range(NUM_LAYERS)]

    out = transformer_encoder_pallas(src, pos, layer_params_list)
    out = jax.block_until_ready(out)

    ref = jax.block_until_ready(ref_encoder(src, pos, layer_params_list))
    assert out.shape == (B, S, D)
    max_err = float(jnp.max(jnp.abs(out - ref)))
    # Tolerance loosened slightly: pl.reciprocal(approx=True) in the softmax
    # denominator introduces ~1e-4-level differences vs. the exact reference.
    assert jnp.allclose(out, ref, atol=5e-3, rtol=5e-3), max_err

    print("KERNEL_OK")
</pallas_src>

<mosaic_0001>
module attributes {stable_mosaic.version = 11 : i64} {
  func.func @encoder_stack_kernel(%arg0: i32, %arg1: memref<2x16x32xf32, #tpu.memory_space<vmem>>, %arg2: memref<2x16x32xf32, #tpu.memory_space<vmem>>, %arg3: memref<1x32x32xf32, #tpu.memory_space<vmem>>, %arg4: memref<1x32x32xf32, #tpu.memory_space<vmem>>, %arg5: memref<1x32x32xf32, #tpu.memory_space<vmem>>, %arg6: memref<1x1x32xf32, #tpu.memory_space<vmem>>, %arg7: memref<1x1x32xf32, #tpu.memory_space<vmem>>, %arg8: memref<1x1x32xf32, #tpu.memory_space<vmem>>, %arg9: memref<1x32x32xf32, #tpu.memory_space<vmem>>, %arg10: memref<1x1x32xf32, #tpu.memory_space<vmem>>, %arg11: memref<1x32x64xf32, #tpu.memory_space<vmem>>, %arg12: memref<1x1x64xf32, #tpu.memory_space<vmem>>, %arg13: memref<1x64x32xf32, #tpu.memory_space<vmem>>, %arg14: memref<1x1x32xf32, #tpu.memory_space<vmem>>, %arg15: memref<1x1x32xf32, #tpu.memory_space<vmem>>, %arg16: memref<1x1x32xf32, #tpu.memory_space<vmem>>, %arg17: memref<1x1x32xf32, #tpu.memory_space<vmem>>, %arg18: memref<1x1x32xf32, #tpu.memory_space<vmem>>, %arg19: memref<2x16x32xf32, #tpu.memory_space<vmem>>, %arg20: memref<32x32xf32, #tpu.memory_space<vmem>>) attributes {dimension_semantics = [#tpu.dimension_semantics<arbitrary>], iteration_bounds = array<i64: 2>, scalar_prefetch = 0 : i64, scratch_operands = 1 : i64, tpu.core_type = #tpu.core_type<tc>, window_params = [{pipeline_mode = #tpu.pipeline_mode<synchronous>, transform_indices = @transform_0, window_bounds = array<i64: 2, 16, 32>}, {pipeline_mode = #tpu.pipeline_mode<synchronous>, transform_indices = @transform_1, window_bounds = array<i64: 2, 16, 32>}, {transform_indices = @transform_2, window_bounds = array<i64: 1, 32, 32>}, {transform_indices = @transform_3, window_bounds = array<i64: 1, 32, 32>}, {transform_indices = @transform_4, window_bounds = array<i64: 1, 32, 32>}, {transform_indices = @transform_5, window_bounds = array<i64: 1, 1, 32>}, {transform_indices = @transform_6, window_bounds = array<i64: 1, 1, 32>}, {transform_indices = @transform_7, window_bounds = array<i64: 1, 1, 32>}, {transform_indices = @transform_8, window_bounds = array<i64: 1, 32, 32>}, {transform_indices = @transform_9, window_bounds = array<i64: 1, 1, 32>}, {transform_indices = @transform_10, window_bounds = array<i64: 1, 32, 64>}, {transform_indices = @transform_11, window_bounds = array<i64: 1, 1, 64>}, {transform_indices = @transform_12, window_bounds = array<i64: 1, 64, 32>}, {transform_indices = @transform_13, window_bounds = array<i64: 1, 1, 32>}, {transform_indices = @transform_14, window_bounds = array<i64: 1, 1, 32>}, {transform_indices = @transform_15, window_bounds = array<i64: 1, 1, 32>}, {transform_indices = @transform_16, window_bounds = array<i64: 1, 1, 32>}, {transform_indices = @transform_17, window_bounds = array<i64: 1, 1, 32>}, {pipeline_mode = #tpu.pipeline_mode<synchronous>, transform_indices = @transform_18, window_bounds = array<i64: 2, 16, 32>}]} {
    %c0_i32 = arith.constant 0 : i32
    %0 = arith.cmpi eq, %arg0, %c0_i32 : i32
    %1 = arith.extui %0 : i1 to i32
    %c0_i32_0 = arith.constant 0 : i32
    %2 = arith.cmpi ne, %1, %c0_i32_0 : i32
    scf.if %2 {
      %c0_92 = arith.constant 0 : index
      %c0_93 = arith.constant 0 : index
      %c0_94 = arith.constant 0 : index
      %182 = vector.load %arg1[%c0_92, %c0_93, %c0_94] : memref<2x16x32xf32, #tpu.memory_space<vmem>>, vector<2x16x32xf32>
      %183 = vector.shape_cast %182 : vector<2x16x32xf32> to vector<32x32xf32>
      %c0_95 = arith.constant 0 : index
      %c0_96 = arith.constant 0 : index
      %184 = vector.load %arg20[%c0_95, %c0_96] : memref<32x32xf32, #tpu.memory_space<vmem>>, vector<32x32xf32>
      tpu.vector_store %arg20[%c0_95, %c0_96], %183 {strides = array<i32>} : memref<32x32xf32, #tpu.memory_space<vmem>>, vector<32x32xf32>,
    } else {
    }
    %c0 = arith.constant 0 : index
    %c0_1 = arith.constant 0 : index
    %3 = vector.load %arg20[%c0, %c0_1] : memref<32x32xf32, #tpu.memory_space<vmem>>, vector<32x32xf32>
    %c0_2 = arith.constant 0 : index
    %c0_3 = arith.constant 0 : index
    %c0_4 = arith.constant 0 : index
    %4 = vector.load %arg2[%c0_2, %c0_3, %c0_4] : memref<2x16x32xf32, #tpu.memory_space<vmem>>, vector<2x16x32xf32>
    %5 = vector.shape_cast %4 : vector<2x16x32xf32> to vector<32x32xf32>
    %c0_5 = arith.constant 0 : index
    %c0_6 = arith.constant 0 : index
    %c0_7 = arith.constant 0 : index
    %6 = vector.load %arg3[%c0_5, %c0_6, %c0_7] : memref<1x32x32xf32, #tpu.memory_space<vmem>>, vector<1x32x32xf32>
    %7 = vector.shape_cast %6 : vector<1x32x32xf32> to vector<32x32xf32>
    %c0_8 = arith.constant 0 : index
    %c0_9 = arith.constant 0 : index
    %c0_10 = arith.constant 0 : index
    %8 = vector.load %arg4[%c0_8, %c0_9, %c0_10] : memref<1x32x32xf32, #tpu.memory_space<vmem>>, vector<1x32x32xf32>
    %9 = vector.shape_cast %8 : vector<1x32x32xf32> to vector<32x32xf32>
    %c0_11 = arith.constant 0 : index
    %c0_12 = arith.constant 0 : index
    %c0_13 = arith.constant 0 : index
    %10 = vector.load %arg5[%c0_11, %c0_12, %c0_13] : memref<1x32x32xf32, #tpu.memory_space<vmem>>, vector<1x32x32xf32>
    %11 = vector.shape_cast %10 : vector<1x32x32xf32> to vector<32x32xf32>
    %c0_14 = arith.constant 0 : index
    %c0_15 = arith.constant 0 : index
    %c0_16 = arith.constant 0 : index
    %12 = vector.load %arg9[%c0_14, %c0_15, %c0_16] : memref<1x32x32xf32, #tpu.memory_space<vmem>>, vector<1x32x32xf32>
    %13 = vector.shape_cast %12 : vector<1x32x32xf32> to vector<32x32xf32>
    %c0_17 = arith.constant 0 : index
    %c0_18 = arith.constant 0 : index
    %c0_19 = arith.constant 0 : index
    %14 = vector.load %arg6[%c0_17, %c0_18, %c0_19] : memref<1x1x32xf32, #tpu.memory_space<vmem>>, vector<1x1x32xf32>
    %15 = vector.shape_cast %14 : vector<1x1x32xf32> to vector<1x32xf32>
    %c0_20 = arith.constant 0 : index
    %c0_21 = arith.constant 0 : index
    %c0_22 = arith.constant 0 : index
    %16 = vector.load %arg7[%c0_20, %c0_21, %c0_22] : memref<1x1x32xf32, #tpu.memory_space<vmem>>, vector<1x1x32xf32>
    %17 = vector.shape_cast %16 : vector<1x1x32xf32> to vector<1x32xf32>
    %c0_23 = arith.constant 0 : index
    %c0_24 = arith.constant 0 : index
    %c0_25 = arith.constant 0 : index
    %18 = vector.load %arg8[%c0_23, %c0_24, %c0_25] : memref<1x1x32xf32, #tpu.memory_space<vmem>>, vector<1x1x32xf32>
    %19 = vector.shape_cast %18 : vector<1x1x32xf32> to vector<1x32xf32>
    %c0_26 = arith.constant 0 : index
    %c0_27 = arith.constant 0 : index
    %c0_28 = arith.constant 0 : index
    %20 = vector.load %arg10[%c0_26, %c0_27, %c0_28] : memref<1x1x32xf32, #tpu.memory_space<vmem>>, vector<1x1x32xf32>
    %21 = vector.shape_cast %20 : vector<1x1x32xf32> to vector<1x32xf32>
    %c0_29 = arith.constant 0 : index
    %c0_30 = arith.constant 0 : index
    %c0_31 = arith.constant 0 : index
    %22 = vector.load %arg11[%c0_29, %c0_30, %c0_31] : memref<1x32x64xf32, #tpu.memory_space<vmem>>, vector<1x32x64xf32>
    %23 = vector.shape_cast %22 : vector<1x32x64xf32> to vector<32x64xf32>
    %c0_32 = arith.constant 0 : index
    %c0_33 = arith.constant 0 : index
    %c0_34 = arith.constant 0 : index
    %24 = vector.load %arg12[%c0_32, %c0_33, %c0_34] : memref<1x1x64xf32, #tpu.memory_space<vmem>>, vector<1x1x64xf32>
    %25 = vector.shape_cast %24 : vector<1x1x64xf32> to vector<1x64xf32>
    %c0_35 = arith.constant 0 : index
    %c0_36 = arith.constant 0 : index
    %c0_37 = arith.constant 0 : index
    %26 = vector.load %arg13[%c0_35, %c0_36, %c0_37] : memref<1x64x32xf32, #tpu.memory_space<vmem>>, vector<1x64x32xf32>
    %27 = vector.shape_cast %26 : vector<1x64x32xf32> to vector<64x32xf32>
    %c0_38 = arith.constant 0 : index
    %c0_39 = arith.constant 0 : index
    %c0_40 = arith.constant 0 : index
    %28 = vector.load %arg14[%c0_38, %c0_39, %c0_40] : memref<1x1x32xf32, #tpu.memory_space<vmem>>, vector<1x1x32xf32>
    %29 = vector.shape_cast %28 : vector<1x1x32xf32> to vector<1x32xf32>
    %c0_41 = arith.constant 0 : index
    %c0_42 = arith.constant 0 : index
    %c0_43 = arith.constant 0 : index
    %30 = vector.load %arg15[%c0_41, %c0_42, %c0_43] : memref<1x1x32xf32, #tpu.memory_space<vmem>>, vector<1x1x32xf32>
    %31 = vector.shape_cast %30 : vector<1x1x32xf32> to vector<1x32xf32>
    %c0_44 = arith.constant 0 : index
    %c0_45 = arith.constant 0 : index
    %c0_46 = arith.constant 0 : index
    %32 = vector.load %arg16[%c0_44, %c0_45, %c0_46] : memref<1x1x32xf32, #tpu.memory_space<vmem>>, vector<1x1x32xf32>
    %33 = vector.shape_cast %32 : vector<1x1x32xf32> to vector<1x32xf32>
    %c0_47 = arith.constant 0 : index
    %c0_48 = arith.constant 0 : index
    %c0_49 = arith.constant 0 : index
    %34 = vector.load %arg17[%c0_47, %c0_48, %c0_49] : memref<1x1x32xf32, #tpu.memory_space<vmem>>, vector<1x1x32xf32>
    %35 = vector.shape_cast %34 : vector<1x1x32xf32> to vector<1x32xf32>
    %c0_50 = arith.constant 0 : index
    %c0_51 = arith.constant 0 : index
    %c0_52 = arith.constant 0 : index
    %36 = vector.load %arg18[%c0_50, %c0_51, %c0_52] : memref<1x1x32xf32, #tpu.memory_space<vmem>>, vector<1x1x32xf32>
    %37 = vector.shape_cast %36 : vector<1x1x32xf32> to vector<1x32xf32>
    %38 = arith.addf %3, %5 : vector<32x32xf32>
    %cst = arith.constant dense<0.000000e+00> : vector<32x32xf32>
    %39 = tpu.matmul %38, %7, %cst {dimension_numbers = #tpu.dot_dimension_numbers<[1], [0], [0], [1], [0, 0, 1, 1], [], []>} : vector<32x32xf32>, vector<32x32xf32>, vector<32x32xf32> -> vector<32x32xf32>
    %40 = vector.broadcast %15 : vector<1x32xf32> to vector<32x32xf32>
    %41 = arith.addf %39, %40 : vector<32x32xf32>
    %cst_53 = arith.constant dense<0.000000e+00> : vector<32x32xf32>
    %42 = tpu.matmul %38, %9, %cst_53 {dimension_numbers = #tpu.dot_dimension_numbers<[1], [0], [0], [1], [0, 0, 1, 1], [], []>} : vector<32x32xf32>, vector<32x32xf32>, vector<32x32xf32> -> vector<32x32xf32>
    %43 = vector.broadcast %17 : vector<1x32xf32> to vector<32x32xf32>
    %44 = arith.addf %42, %43 : vector<32x32xf32>
    %cst_54 = arith.constant dense<0.000000e+00> : vector<32x32xf32>
    %45 = tpu.matmul %3, %11, %cst_54 {dimension_numbers = #tpu.dot_dimension_numbers<[1], [0], [0], [1], [0, 0, 1, 1], [], []>} : vector<32x32xf32>, vector<32x32xf32>, vector<32x32xf32> -> vector<32x32xf32>
    %46 = vector.broadcast %19 : vector<1x32xf32> to vector<32x32xf32>
    %47 = arith.addf %45, %46 : vector<32x32xf32>
    %48 = vector.shape_cast %41 : vector<32x32xf32> to vector<2x16x32xf32>
    %49 = vector.shape_cast %44 : vector<32x32xf32> to vector<2x16x32xf32>
    %50 = vector.shape_cast %47 : vector<32x32xf32> to vector<2x16x32xf32>
    %51 = vector.extract_strided_slice %48 {offsets = [0, 0, 0], sizes = [2, 16, 8], strides = [1, 1, 1]} : vector<2x16x32xf32> to vector<2x16x8xf32>
    %52 = vector.extract_strided_slice %49 {offsets = [0, 0, 0], sizes = [2, 16, 8], strides = [1, 1, 1]} : vector<2x16x32xf32> to vector<2x16x8xf32>
    %53 = vector.extract_strided_slice %50 {offsets = [0, 0, 0], sizes = [2, 16, 8], strides = [1, 1, 1]} : vector<2x16x32xf32> to vector<2x16x8xf32>
    "tpu.trace_start"() <{level = 10 : i32, message = "bqd,bkd->bqk"}> : () -> ()
    %cst_55 = arith.constant dense<0.000000e+00> : vector<2x16x16xf32>
    %54 = tpu.matmul %51, %52, %cst_55 {dimension_numbers = #tpu.dot_dimension_numbers<[2], [2], [1], [1], [0, 0, 0, 1, 1, 1], [0], [0]>} : vector<2x16x8xf32>, vector<2x16x8xf32>, vector<2x16x16xf32> -> vector<2x16x16xf32>
    "tpu.trace_stop"() : () -> ()
    %cst_56 = arith.constant 0.353553385 : f32
    %55 = vector.broadcast %cst_56 : f32 to vector<2x16x16xf32>
    %56 = arith.mulf %54, %55 : vector<2x16x16xf32>
    %cst_57 = arith.constant dense<0xFF800000> : vector<2x16xf32>
    %57 = vector.multi_reduction <maximumf>, %56, %cst_57 [2] : vector<2x16x16xf32> to vector<2x16xf32>
    %58 = vector.shape_cast %57 : vector<2x16xf32> to vector<2x16x1xf32>
    %59 = vector.broadcast %58 : vector<2x16x1xf32> to vector<2x16x16xf32>
    %60 = arith.subf %56, %59 : vector<2x16x16xf32>
    %61 = math.exp %60 : vector<2x16x16xf32>
    %cst_58 = arith.constant dense<0.000000e+00> : vector<2x16xf32>
    %62 = vector.multi_reduction <add>, %61, %cst_58 [2] : vector<2x16x16xf32> to vector<2x16xf32>
    %63 = vector.shape_cast %62 : vector<2x16xf32> to vector<2x16x1xf32>
    %64 = tpu.reciprocal %63 {approx = true} : vector<2x16x1xf32> -> vector<2x16x1xf32>
    %65 = vector.broadcast %64 : vector<2x16x1xf32> to vector<2x16x16xf32>
    %66 = arith.mulf %61, %65 : vector<2x16x16xf32>
    "tpu.trace_start"() <{level = 10 : i32, message = "bqk,bkd->bqd"}> : () -> ()
    %cst_59 = arith.constant dense<0.000000e+00> : vector<2x16x8xf32>
    %67 = tpu.matmul %66, %53, %cst_59 {dimension_numbers = #tpu.dot_dimension_numbers<[2], [1], [1], [2], [0, 0, 0, 1, 1, 2], [0], [0]>} : vector<2x16x16xf32>, vector<2x16x8xf32>, vector<2x16x8xf32> -> vector<2x16x8xf32>
    "tpu.trace_stop"() : () -> ()
    %68 = vector.extract_strided_slice %48 {offsets = [0, 0, 8], sizes = [2, 16, 8], strides = [1, 1, 1]} : vector<2x16x32xf32> to vector<2x16x8xf32>
    %69 = vector.extract_strided_slice %49 {offsets = [0, 0, 8], sizes = [2, 16, 8], strides = [1, 1, 1]} : vector<2x16x32xf32> to vector<2x16x8xf32>
    %70 = vector.extract_strided_slice %50 {offsets = [0, 0, 8], sizes = [2, 16, 8], strides = [1, 1, 1]} : vector<2x16x32xf32> to vector<2x16x8xf32>
    "tpu.trace_start"() <{level = 10 : i32, message = "bqd,bkd->bqk"}> : () -> ()
    %cst_60 = arith.constant dense<0.000000e+00> : vector<2x16x16xf32>
    %71 = tpu.matmul %68, %69, %cst_60 {dimension_numbers = #tpu.dot_dimension_numbers<[2], [2], [1], [1], [0, 0, 0, 1, 1, 1], [0], [0]>} : vector<2x16x8xf32>, vector<2x16x8xf32>, vector<2x16x16xf32> -> vector<2x16x16xf32>
    "tpu.trace_stop"() : () -> ()
    %cst_61 = arith.constant 0.353553385 : f32
    %72 = vector.broadcast %cst_61 : f32 to vector<2x16x16xf32>
    %73 = arith.mulf %71, %72 : vector<2x16x16xf32>
    %cst_62 = arith.constant dense<0xFF800000> : vector<2x16xf32>
    %74 = vector.multi_reduction <maximumf>, %73, %cst_62 [2] : vector<2x16x16xf32> to vector<2x16xf32>
    %75 = vector.shape_cast %74 : vector<2x16xf32> to vector<2x16x1xf32>
    %76 = vector.broadcast %75 : vector<2x16x1xf32> to vector<2x16x16xf32>
    %77 = arith.subf %73, %76 : vector<2x16x16xf32>
    %78 = math.exp %77 : vector<2x16x16xf32>
    %cst_63 = arith.constant dense<0.000000e+00> : vector<2x16xf32>
    %79 = vector.multi_reduction <add>, %78, %cst_63 [2] : vector<2x16x16xf32> to vector<2x16xf32>
    %80 = vector.shape_cast %79 : vector<2x16xf32> to vector<2x16x1xf32>
    %81 = tpu.reciprocal %80 {approx = true} : vector<2x16x1xf32> -> vector<2x16x1xf32>
    %82 = vector.broadcast %81 : vector<2x16x1xf32> to vector<2x16x16xf32>
    %83 = arith.mulf %78, %82 : vector<2x16x16xf32>
    "tpu.trace_start"() <{level = 10 : i32, message = "bqk,bkd->bqd"}> : () -> ()
    %cst_64 = arith.constant dense<0.000000e+00> : vector<2x16x8xf32>
    %84 = tpu.matmul %83, %70, %cst_64 {dimension_numbers = #tpu.dot_dimension_numbers<[2], [1], [1], [2], [0, 0, 0, 1, 1, 2], [0], [0]>} : vector<2x16x16xf32>, vector<2x16x8xf32>, vector<2x16x8xf32> -> vector<2x16x8xf32>
    "tpu.trace_stop"() : () -> ()
    %85 = vector.extract_strided_slice %48 {offsets = [0, 0, 16], sizes = [2, 16, 8], strides = [1, 1, 1]} : vector<2x16x32xf32> to vector<2x16x8xf32>
    %86 = vector.extract_strided_slice %49 {offsets = [0, 0, 16], sizes = [2, 16, 8], strides = [1, 1, 1]} : vector<2x16x32xf32> to vector<2x16x8xf32>
    %87 = vector.extract_strided_slice %50 {offsets = [0, 0, 16], sizes = [2, 16, 8], strides = [1, 1, 1]} : vector<2x16x32xf32> to vector<2x16x8xf32>
    "tpu.trace_start"() <{level = 10 : i32, message = "bqd,bkd->bqk"}> : () -> ()
    %cst_65 = arith.constant dense<0.000000e+00> : vector<2x16x16xf32>
    %88 = tpu.matmul %85, %86, %cst_65 {dimension_numbers = #tpu.dot_dimension_numbers<[2], [2], [1], [1], [0, 0, 0, 1, 1, 1], [0], [0]>} : vector<2x16x8xf32>, vector<2x16x8xf32>, vector<2x16x16xf32> -> vector<2x16x16xf32>
    "tpu.trace_stop"() : () -> ()
    %cst_66 = arith.constant 0.353553385 : f32
    %89 = vector.broadcast %cst_66 : f32 to vector<2x16x16xf32>
    %90 = arith.mulf %88, %89 : vector<2x16x16xf32>
    %cst_67 = arith.constant dense<0xFF800000> : vector<2x16xf32>
    %91 = vector.multi_reduction <maximumf>, %90, %cst_67 [2] : vector<2x16x16xf32> to vector<2x16xf32>
    %92 = vector.shape_cast %91 : vector<2x16xf32> to vector<2x16x1xf32>
    %93 = vector.broadcast %92 : vector<2x16x1xf32> to vector<2x16x16xf32>
    %94 = arith.subf %90, %93 : vector<2x16x16xf32>
    %95 = math.exp %94 : vector<2x16x16xf32>
    %cst_68 = arith.constant dense<0.000000e+00> : vector<2x16xf32>
    %96 = vector.multi_reduction <add>, %95, %cst_68 [2] : vector<2x16x16xf32> to vector<2x16xf32>
    %97 = vector.shape_cast %96 : vector<2x16xf32> to vector<2x16x1xf32>
    %98 = tpu.reciprocal %97 {approx = true} : vector<2x16x1xf32> -> vector<2x16x1xf32>
    %99 = vector.broadcast %98 : vector<2x16x1xf32> to vector<2x16x16xf32>
    %100 = arith.mulf %95, %99 : vector<2x16x16xf32>
    "tpu.trace_start"() <{level = 10 : i32, message = "bqk,bkd->bqd"}> : () -> ()
    %cst_69 = arith.constant dense<0.000000e+00> : vector<2x16x8xf32>
    %101 = tpu.matmul %100, %87, %cst_69 {dimension_numbers = #tpu.dot_dimension_numbers<[2], [1], [1], [2], [0, 0, 0, 1, 1, 2], [0], [0]>} : vector<2x16x16xf32>, vector<2x16x8xf32>, vector<2x16x8xf32> -> vector<2x16x8xf32>
    "tpu.trace_stop"() : () -> ()
    %102 = vector.extract_strided_slice %48 {offsets = [0, 0, 24], sizes = [2, 16, 8], strides = [1, 1, 1]} : vector<2x16x32xf32> to vector<2x16x8xf32>
    %103 = vector.extract_strided_slice %49 {offsets = [0, 0, 24], sizes = [2, 16, 8], strides = [1, 1, 1]} : vector<2x16x32xf32> to vector<2x16x8xf32>
    %104 = vector.extract_strided_slice %50 {offsets = [0, 0, 24], sizes = [2, 16, 8], strides = [1, 1, 1]} : vector<2x16x32xf32> to vector<2x16x8xf32>
    "tpu.trace_start"() <{level = 10 : i32, message = "bqd,bkd->bqk"}> : () -> ()
    %cst_70 = arith.constant dense<0.000000e+00> : vector<2x16x16xf32>
    %105 = tpu.matmul %102, %103, %cst_70 {dimension_numbers = #tpu.dot_dimension_numbers<[2], [2], [1], [1], [0, 0, 0, 1, 1, 1], [0], [0]>} : vector<2x16x8xf32>, vector<2x16x8xf32>, vector<2x16x16xf32> -> vector<2x16x16xf32>
    "tpu.trace_stop"() : () -> ()
    %cst_71 = arith.constant 0.353553385 : f32
    %106 = vector.broadcast %cst_71 : f32 to vector<2x16x16xf32>
    %107 = arith.mulf %105, %106 : vector<2x16x16xf32>
    %cst_72 = arith.constant dense<0xFF800000> : vector<2x16xf32>
    %108 = vector.multi_reduction <maximumf>, %107, %cst_72 [2] : vector<2x16x16xf32> to vector<2x16xf32>
    %109 = vector.shape_cast %108 : vector<2x16xf32> to vector<2x16x1xf32>
    %110 = vector.broadcast %109 : vector<2x16x1xf32> to vector<2x16x16xf32>
    %111 = arith.subf %107, %110 : vector<2x16x16xf32>
    %112 = math.exp %111 : vector<2x16x16xf32>
    %cst_73 = arith.constant dense<0.000000e+00> : vector<2x16xf32>
    %113 = vector.multi_reduction <add>, %112, %cst_73 [2] : vector<2x16x16xf32> to vector<2x16xf32>
    %114 = vector.shape_cast %113 : vector<2x16xf32> to vector<2x16x1xf32>
    %115 = tpu.reciprocal %114 {approx = true} : vector<2x16x1xf32> -> vector<2x16x1xf32>
    %116 = vector.broadcast %115 : vector<2x16x1xf32> to vector<2x16x16xf32>
    %117 = arith.mulf %112, %116 : vector<2x16x16xf32>
    "tpu.trace_start"() <{level = 10 : i32, message = "bqk,bkd->bqd"}> : () -> ()
    %cst_74 = arith.constant dense<0.000000e+00> : vector<2x16x8xf32>
    %118 = tpu.matmul %117, %104, %cst_74 {dimension_numbers = #tpu.dot_dimension_numbers<[2], [1], [1], [2], [0, 0, 0, 1, 1, 2], [0], [0]>} : vector<2x16x16xf32>, vector<2x16x8xf32>, vector<2x16x8xf32> -> vector<2x16x8xf32>
    "tpu.trace_stop"() : () -> ()
    %119 = tpu.concatenate %67, %84, %101, %118 in 2 : vector<2x16x8xf32>, vector<2x16x8xf32>, vector<2x16x8xf32>, vector<2x16x8xf32> -> vector<2x16x32xf32>
    %120 = vector.shape_cast %119 : vector<2x16x32xf32> to vector<32x32xf32>
    %cst_75 = arith.constant dense<0.000000e+00> : vector<32x32xf32>
    %121 = tpu.matmul %120, %13, %cst_75 {dimension_numbers = #tpu.dot_dimension_numbers<[1], [0], [0], [1], [0, 0, 1, 1], [], []>} : vector<32x32xf32>, vector<32x32xf32>, vector<32x32xf32> -> vector<32x32xf32>
    %122 = vector.broadcast %21 : vector<1x32xf32> to vector<32x32xf32>
    %123 = arith.addf %121, %122 : vector<32x32xf32>
    %124 = arith.addf %3, %123 : vector<32x32xf32>
    %cst_76 = arith.constant dense<0.000000e+00> : vector<32xf32>
    %125 = vector.multi_reduction <add>, %124, %cst_76 [1] : vector<32x32xf32> to vector<32xf32>
    %126 = vector.shape_cast %125 : vector<32xf32> to vector<32x1xf32>
    %cst_77 = arith.constant 3.200000e+01 : f32
    %127 = vector.broadcast %cst_77 : f32 to vector<32x1xf32>
    %128 = arith.divf %126, %127 : vector<32x1xf32>
    %129 = vector.broadcast %128 : vector<32x1xf32> to vector<32x32xf32>
    %130 = arith.subf %124, %129 : vector<32x32xf32>
    %131 = arith.mulf %130, %130 : vector<32x32xf32>
    %cst_78 = arith.constant dense<0.000000e+00> : vector<32xf32>
    %132 = vector.multi_reduction <add>, %131, %cst_78 [1] : vector<32x32xf32> to vector<32xf32>
    %133 = vector.shape_cast %132 : vector<32xf32> to vector<32x1xf32>
    %cst_79 = arith.constant 3.200000e+01 : f32
    %134 = vector.broadcast %cst_79 : f32 to vector<32x1xf32>
    %135 = arith.divf %133, %134 : vector<32x1xf32>
    %136 = vector.broadcast %128 : vector<32x1xf32> to vector<32x32xf32>
    %137 = arith.subf %124, %136 : vector<32x32xf32>
    %cst_80 = arith.constant 9.99999974E-6 : f32
    %138 = vector.broadcast %cst_80 : f32 to vector<32x1xf32>
    %139 = arith.addf %135, %138 : vector<32x1xf32>
    %140 = math.rsqrt %139 : vector<32x1xf32>
    %141 = vector.broadcast %140 : vector<32x1xf32> to vector<32x32xf32>
    %142 = arith.mulf %137, %141 : vector<32x32xf32>
    %143 = vector.broadcast %31 : vector<1x32xf32> to vector<32x32xf32>
    %144 = arith.mulf %142, %143 : vector<32x32xf32>
    %145 = vector.broadcast %33 : vector<1x32xf32> to vector<32x32xf32>
    %146 = arith.addf %144, %145 : vector<32x32xf32>
    %cst_81 = arith.constant dense<0.000000e+00> : vector<32x64xf32>
    %147 = tpu.matmul %146, %23, %cst_81 {dimension_numbers = #tpu.dot_dimension_numbers<[1], [0], [0], [1], [0, 0, 1, 1], [], []>} : vector<32x32xf32>, vector<32x64xf32>, vector<32x64xf32> -> vector<32x64xf32>
    %148 = vector.broadcast %25 : vector<1x64xf32> to vector<32x64xf32>
    %149 = arith.addf %147, %148 : vector<32x64xf32>
    %cst_82 = arith.constant 0.000000e+00 : f32
    %150 = vector.broadcast %cst_82 : f32 to vector<32x64xf32>
    %151 = arith.maximumf %149, %150 : vector<32x64xf32>
    %cst_83 = arith.constant dense<0.000000e+00> : vector<32x32xf32>
    %152 = tpu.matmul %151, %27, %cst_83 {dimension_numbers = #tpu.dot_dimension_numbers<[1], [0], [0], [1], [0, 0, 1, 1], [], []>} : vector<32x64xf32>, vector<64x32xf32>, vector<32x32xf32> -> vector<32x32xf32>
    %153 = vector.broadcast %29 : vector<1x32xf32> to vector<32x32xf32>
    %154 = arith.addf %152, %153 : vector<32x32xf32>
    %155 = arith.addf %146, %154 : vector<32x32xf32>
    %cst_84 = arith.constant dense<0.000000e+00> : vector<32xf32>
    %156 = vector.multi_reduction <add>, %155, %cst_84 [1] : vector<32x32xf32> to vector<32xf32>
    %157 = vector.shape_cast %156 : vector<32xf32> to vector<32x1xf32>
    %cst_85 = arith.constant 3.200000e+01 : f32
    %158 = vector.broadcast %cst_85 : f32 to vector<32x1xf32>
    %159 = arith.divf %157, %158 : vector<32x1xf32>
    %160 = vector.broadcast %159 : vector<32x1xf32> to vector<32x32xf32>
    %161 = arith.subf %155, %160 : vector<32x32xf32>
    %162 = arith.mulf %161, %161 : vector<32x32xf32>
    %cst_86 = arith.constant dense<0.000000e+00> : vector<32xf32>
    %163 = vector.multi_reduction <add>, %162, %cst_86 [1] : vector<32x32xf32> to vector<32xf32>
    %164 = vector.shape_cast %163 : vector<32xf32> to vector<32x1xf32>
    %cst_87 = arith.constant 3.200000e+01 : f32
    %165 = vector.broadcast %cst_87 : f32 to vector<32x1xf32>
    %166 = arith.divf %164, %165 : vector<32x1xf32>
    %167 = vector.broadcast %159 : vector<32x1xf32> to vector<32x32xf32>
    %168 = arith.subf %155, %167 : vector<32x32xf32>
    %cst_88 = arith.constant 9.99999974E-6 : f32
    %169 = vector.broadcast %cst_88 : f32 to vector<32x1xf32>
    %170 = arith.addf %166, %169 : vector<32x1xf32>
    %171 = math.rsqrt %170 : vector<32x1xf32>
    %172 = vector.broadcast %171 : vector<32x1xf32> to vector<32x32xf32>
    %173 = arith.mulf %168, %172 : vector<32x32xf32>
    %174 = vector.broadcast %35 : vector<1x32xf32> to vector<32x32xf32>
    %175 = arith.mulf %173, %174 : vector<32x32xf32>
    %176 = vector.broadcast %37 : vector<1x32xf32> to vector<32x32xf32>
    %177 = arith.addf %175, %176 : vector<32x32xf32>
    %c0_89 = arith.constant 0 : index
    %c0_90 = arith.constant 0 : index
    %178 = vector.load %arg20[%c0_89, %c0_90] : memref<32x32xf32, #tpu.memory_space<vmem>>, vector<32x32xf32>
    tpu.vector_store %arg20[%c0_89, %c0_90], %177 {strides = array<i32>} : memref<32x32xf32, #tpu.memory_space<vmem>>, vector<32x32xf32>,
    %c1_i32 = arith.constant 1 : i32
    %179 = arith.cmpi eq, %arg0, %c1_i32 : i32
    %180 = arith.extui %179 : i1 to i32
    %c0_i32_91 = arith.constant 0 : i32
    %181 = arith.cmpi ne, %180, %c0_i32_91 : i32
    scf.if %181 {
      %182 = vector.shape_cast %177 : vector<32x32xf32> to vector<2x16x32xf32>
      %c0_92 = arith.constant 0 : index
      %c0_93 = arith.constant 0 : index
      %c0_94 = arith.constant 0 : index
      %183 = vector.load %arg19[%c0_92, %c0_93, %c0_94] : memref<2x16x32xf32, #tpu.memory_space<vmem>>, vector<2x16x32xf32>
      tpu.vector_store %arg19[%c0_92, %c0_93, %c0_94], %182 {strides = array<i32>} : memref<2x16x32xf32, #tpu.memory_space<vmem>>, vector<2x16x32xf32>,
    } else {
    }
    return
  }
  func.func @transform_0(%arg0: i32) -> (i32, i32, i32) {
    %c0_i32 = arith.constant 0 : i32
    %c0_i32_0 = arith.constant 0 : i32
    %c0_i32_1 = arith.constant 0 : i32
    %c0_i32_2 = arith.constant 0 : i32
    return %c0_i32, %c0_i32_0, %c0_i32_1 : i32, i32, i32
  }
  func.func @transform_1(%arg0: i32) -> (i32, i32, i32) {
    %c0_i32 = arith.constant 0 : i32
    %c0_i32_0 = arith.constant 0 : i32
    %c0_i32_1 = arith.constant 0 : i32
    %c0_i32_2 = arith.constant 0 : i32
    return %c0_i32, %c0_i32_0, %c0_i32_1 : i32, i32, i32
  }
  func.func @transform_2(%arg0: i32) -> (i32, i32, i32) {
    %c0_i32 = arith.constant 0 : i32
    %c0_i32_0 = arith.constant 0 : i32
    %c0_i32_1 = arith.constant 0 : i32
    return %arg0, %c0_i32, %c0_i32_0 : i32, i32, i32
  }
  func.func @transform_3(%arg0: i32) -> (i32, i32, i32) {
    %c0_i32 = arith.constant 0 : i32
    %c0_i32_0 = arith.constant 0 : i32
    %c0_i32_1 = arith.constant 0 : i32
    return %arg0, %c0_i32, %c0_i32_0 : i32, i32, i32
  }
  func.func @transform_4(%arg0: i32) -> (i32, i32, i32) {
    %c0_i32 = arith.constant 0 : i32
    %c0_i32_0 = arith.constant 0 : i32
    %c0_i32_1 = arith.constant 0 : i32
    return %arg0, %c0_i32, %c0_i32_0 : i32, i32, i32
  }
  func.func @transform_5(%arg0: i32) -> (i32, i32, i32) {
    %c0_i32 = arith.constant 0 : i32
    %c0_i32_0 = arith.constant 0 : i32
    %c0_i32_1 = arith.constant 0 : i32
    return %arg0, %c0_i32, %c0_i32_0 : i32, i32, i32
  }
  func.func @transform_6(%arg0: i32) -> (i32, i32, i32) {
    %c0_i32 = arith.constant 0 : i32
    %c0_i32_0 = arith.constant 0 : i32
    %c0_i32_1 = arith.constant 0 : i32
    return %arg0, %c0_i32, %c0_i32_0 : i32, i32, i32
  }
  func.func @transform_7(%arg0: i32) -> (i32, i32, i32) {
    %c0_i32 = arith.constant 0 : i32
    %c0_i32_0 = arith.constant 0 : i32
    %c0_i32_1 = arith.constant 0 : i32
    return %arg0, %c0_i32, %c0_i32_0 : i32, i32, i32
  }
  func.func @transform_8(%arg0: i32) -> (i32, i32, i32) {
    %c0_i32 = arith.constant 0 : i32
    %c0_i32_0 = arith.constant 0 : i32
    %c0_i32_1 = arith.constant 0 : i32
    return %arg0, %c0_i32, %c0_i32_0 : i32, i32, i32
  }
  func.func @transform_9(%arg0: i32) -> (i32, i32, i32) {
    %c0_i32 = arith.constant 0 : i32
    %c0_i32_0 = arith.constant 0 : i32
    %c0_i32_1 = arith.constant 0 : i32
    return %arg0, %c0_i32, %c0_i32_0 : i32, i32, i32
  }
  func.func @transform_10(%arg0: i32) -> (i32, i32, i32) {
    %c0_i32 = arith.constant 0 : i32
    %c0_i32_0 = arith.constant 0 : i32
    %c0_i32_1 = arith.constant 0 : i32
    return %arg0, %c0_i32, %c0_i32_0 : i32, i32, i32
  }
  func.func @transform_11(%arg0: i32) -> (i32, i32, i32) {
    %c0_i32 = arith.constant 0 : i32
    %c0_i32_0 = arith.constant 0 : i32
    %c0_i32_1 = arith.constant 0 : i32
    return %arg0, %c0_i32, %c0_i32_0 : i32, i32, i32
  }
  func.func @transform_12(%arg0: i32) -> (i32, i32, i32) {
    %c0_i32 = arith.constant 0 : i32
    %c0_i32_0 = arith.constant 0 : i32
    %c0_i32_1 = arith.constant 0 : i32
    return %arg0, %c0_i32, %c0_i32_0 : i32, i32, i32
  }
  func.func @transform_13(%arg0: i32) -> (i32, i32, i32) {
    %c0_i32 = arith.constant 0 : i32
    %c0_i32_0 = arith.constant 0 : i32
    %c0_i32_1 = arith.constant 0 : i32
    return %arg0, %c0_i32, %c0_i32_0 : i32, i32, i32
  }
  func.func @transform_14(%arg0: i32) -> (i32, i32, i32) {
    %c0_i32 = arith.constant 0 : i32
    %c0_i32_0 = arith.constant 0 : i32
    %c0_i32_1 = arith.constant 0 : i32
    return %arg0, %c0_i32, %c0_i32_0 : i32, i32, i32
  }
  func.func @transform_15(%arg0: i32) -> (i32, i32, i32) {
    %c0_i32 = arith.constant 0 : i32
    %c0_i32_0 = arith.constant 0 : i32
    %c0_i32_1 = arith.constant 0 : i32
    return %arg0, %c0_i32, %c0_i32_0 : i32, i32, i32
  }
  func.func @transform_16(%arg0: i32) -> (i32, i32, i32) {
    %c0_i32 = arith.constant 0 : i32
    %c0_i32_0 = arith.constant 0 : i32
    %c0_i32_1 = arith.constant 0 : i32
    return %arg0, %c0_i32, %c0_i32_0 : i32, i32, i32
  }
  func.func @transform_17(%arg0: i32) -> (i32, i32, i32) {
    %c0_i32 = arith.constant 0 : i32
    %c0_i32_0 = arith.constant 0 : i32
    %c0_i32_1 = arith.constant 0 : i32
    return %arg0, %c0_i32, %c0_i32_0 : i32, i32, i32
  }
  func.func @transform_18(%arg0: i32) -> (i32, i32, i32) {
    %c0_i32 = arith.constant 0 : i32
    %c0_i32_0 = arith.constant 0 : i32
    %c0_i32_1 = arith.constant 0 : i32
    %c0_i32_2 = arith.constant 0 : i32
    return %c0_i32, %c0_i32_0, %c0_i32_1 : i32, i32, i32
  }
}

</mosaic_0001>

<bundles_post_ra>
// kernel: tpu_custom_call.1
= control target key start
LH: loop header
LB: loop body
LE: loop exit
PB: predicated region body
PF: predicated region fallthrough
CT: control target
= control target key end

     0   :  { %s5382_s0 = inlined_call_operand.hbm [shape: f32[2,16,32], index: 0, kind: input, shape index: {}]   ;;  %s5383_s1 = inlined_call_operand.hbm [shape: f32[2,16,32], index: 1, kind: input, shape index: {}]   ;;  %s5384_s2 = inlined_call_operand.vmem [shape: f32[2,32,32], index: 2, kind: input, shape index: {}]   ;;  %s5385_s3 = inlined_call_operand.vmem [shape: f32[2,32,32], index: 3, kind: input, shape index: {}]   ;;  %s5386_s4 = inlined_call_operand.vmem [shape: f32[2,32,32], index: 4, kind: input, shape index: {}]   ;;  %s5387_s5 = inlined_call_operand.vmem [shape: f32[2,1,32], index: 5, kind: input, shape index: {}]   ;;  %s5388_s6 = inlined_call_operand.vmem [shape: f32[2,1,32], index: 6, kind: input, shape index: {}]   ;;  %s5389_s7 = inlined_call_operand.vmem [shape: f32[2,1,32], index: 7, kind: input, shape index: {}]   ;;  %s5390_s8 = inlined_call_operand.hbm [shape: f32[2,32,32], index: 8, kind: input, shape index: {}]   ;;  %s5391_s9 = inlined_call_operand.vmem [shape: f32[2,1,32], index: 9, kind: input, shape index: {}]   ;;  %s5392_s10 = inlined_call_operand.hbm [shape: f32[2,32,64], index: 10, kind: input, shape index: {}]   ;;  %s5393_s11 = inlined_call_operand.vmem [shape: f32[2,1,64], index: 11, kind: input, shape index: {}]   ;;  %s5394_s12 = inlined_call_operand.vmem [shape: f32[2,64,32], index: 12, kind: input, shape index: {}]   ;;  %s5395_s13 = inlined_call_operand.vmem [shape: f32[2,1,32], index: 13, kind: input, shape index: {}]   ;;  %s5396_s14 = inlined_call_operand.vmem [shape: f32[2,1,32], index: 14, kind: input, shape index: {}]   ;;  %s5397_s15 = inlined_call_operand.vmem [shape: f32[2,1,32], index: 15, kind: input, shape index: {}]   ;;  %s5398_s16 = inlined_call_operand.vmem [shape: f32[2,1,32], index: 16, kind: input, shape index: {}]   ;;  %s5399_s17 = inlined_call_operand.vmem [shape: f32[2,1,32], index: 17, kind: input, shape index: {}]   ;;  %s5400_s18 = inlined_call_operand.hbm [shape: f32[2,16,32], index: 18, kind: output, shape index: {}]  }
   0x1   :  { %5423 = sst [smem:[#allocation20_spill]] %s5382_s0 }
   0x2   :  { %5424 = sst [smem:[#allocation21_spill]] %s5383_s1 }
   0x3   :  { %5425 = sst [smem:[#allocation22_spill]] %s5384_s2 }
   0x4   :  { %5426 = sst [smem:[#allocation23_spill]] %s5385_s3 }
   0x5   :  { %5427 = sst [smem:[#allocation24_spill]] %s5386_s4 }
   0x6   :  { %5428 = sst [smem:[#allocation25_spill]] %s5390_s8 }
   0x7   :  { %5429 = sst [smem:[#allocation26_spill]] %s5391_s9 }
   0x8   :  { %5430 = sst [smem:[#allocation27_spill]] %s5392_s10 }
   0x9   :  { %5431 = sst [smem:[#allocation28_spill]] %s5393_s11 }
   0xa   :  { %5432 = sst [smem:[#allocation29_spill]] %s5394_s12 }
   0xb   :  { %5433 = sst [smem:[#allocation30_spill]] %s5395_s13 }
   0xc   :  { %5434 = sst [smem:[#allocation31_spill]] %s5396_s14 }
   0xd   :  { %5435 = sst [smem:[#allocation32_spill]] %s5397_s15 }
   0xe   :  { %5436 = sst [smem:[#allocation33_spill]] %s5398_s16 }
   0xf   :  { %5437 = sst [smem:[#allocation34_spill]] %s5399_s17 }
  0x10   :  { %5438 = sst [smem:[#allocation35_spill]] %s5400_s18 }
  0x11   :  { %23 = vsyncpa [#allocation4], 0 }
  0x12   :  { %24 = vsyncpa [#allocation7], 0 }
  0x13   :  { %25 = vsyncpa [#allocation5], 0  ;;  %s4703_s27 = smov 0   ;;  %s4705_s28 = smov 0  }
  0x14   :  { %s4707_s29 = smov 0   ;;  %s4709_s30 = smov 0  }
  0x15 LB: > { %5439 = sst [smem:[#allocation15_spill]] %s4584_s28  ;;  %s4722_s0 = sadd.s32 4294967295, %s4592_s30   ;;  %s4592_s30 = sphi %s4709_s30, %s5497_s30   ;;  %s4588_s29 = sphi %s4707_s29, %s5500_s29   ;;  %s4584_s28 = sphi %s4705_s28, %s5499_s28   ;;  %s4580_s27 = sphi %s4703_s27, %s5498_s27  }
  0x16   : > { %5440 = sst [smem:[#allocation16_spill]] %s4588_s29  ;;  %s4725_s19 = sadd.s32 1, %s4592_s30  }
  0x17   : > { %5441 = sst [smem:[#allocation17_spill]] %s4725_s19  ;;  %s233_s1 = ssub.s32 %s4592_s30, %s4725_s19 }
  0x18   : > { %s236_s20 = sadd.s32 1, %s4588_s29  ;;  %p234_p0 = scmp.eq.s32.totalorder %s233_s1, 0 }
  0x19   : > { %p243_p1 = scmp.ne.s32.totalorder %s4588_s29, %s4584_s28  ;;  %p244_p2 = scmp.eq.s32.totalorder %s4592_s30, 0 }
  0x1a   : > { %p249_p3 = scmp.ne.s32.totalorder %s4584_s28, %s4580_s27  ;;  %p5407_p5 = scmp.eq.s32.totalorder %s4722_s0, 0 }
  0x1b   : > { %s4735_s21 = scalar_select %p234_p0, %s4588_s29, %s236_s20  }
  0x1c   : > { %p4737_p4 = por %p244_p2, %p243_p1  ;;  %p3606_p6 = scmp.ge.s32.totalorder %s4592_s30, 1 }
  0x1d   : > { %5442 = sst [smem:[#allocation18_spill]] %s4735_s21  ;;  %p515_p7 = scmp.lt.s32.totalorder %s4592_s30, 3 }
  0x1e   : > { %p4746_p8 = por %p5407_p5, %p249_p3  ;;  %s4594_s24 = smov [#allocation3]  }
  0x1f   : > { %p4751_p10 = pnand %p3606_p6, %p515_p7  ;;  %s527_s25 = sshll.u32 %s4594_s24, 4  ;;  %s528_s25 = int_to_ptr.vmem [resolvable:$true] %s527_s25 }
  0x20   : > { %s5444_s2 = scalar_select %p4746_p8, 1, 0 }
  0x21   : > { %s5445_s23 = scalar_select %p4751_p10, 1, 0 }
  0x22   : > { %p4195_p11 = pneg %p4751_p10  ;;  %p4211_p13 = scmp.lt.s32.totalorder %s4592_s30, 2 }
  0x23   : > { %s598_s1 = sand.u32 1, %s4588_s29   ;;  %s5448_s19 = sld [smem:[#allocation20_spill]] }
  0x24   : > { %p4759_p12 = pnand %p4195_p11, %p5407_p5  ;;  %p4768_p0 = pnand %p4211_p13, %p4737_p4 }
  0x26   : > { %s5447_s20 = scalar_select %p4768_p0, 1, 0 }
  0x27   : > { %p5416_p2 = pneg %p4759_p12 }
  0x29   : > { %s4404_s18 = scalar_lea.hbm %s5448_s19, 512 }
  0x2a   : > { %p4405_p1 = scmp.ne.s32.totalorder %s5448_s19, %s4404_s18  ;;  %p4411_p4 = scmp.lt.u32.totalorder %s4404_s18, %s5448_s19 }
  0x2c   : > { %p4407_p3 = pnand %p5416_p2, %p4405_p1 }
  0x2e   : > { %p4408_p6 = pneg %p4407_p3 }
  0x30   : > { %p4413_p7 = pnand %p4411_p4, %p4408_p6 }
  0x32   : > { %4416 = shalt.err (!%p4413_p7)
}
  0x33   : > { %s4417_s29 = scalar_lea.vmem %s528_s25, 512  ;;  %p4425_p5 = scmp.lt.s32.totalorder %s528_s25, %s528_s25 }
  0x34   : > { %p4418_p11 = scmp.ne.s32.totalorder %s528_s25, %s4417_s29  ;;  %p4426_p8 = scmp.lt.s32.totalorder %s4417_s29, %s4417_s29 }
  0x36   : > { %p4420_p13 = pnand %p4418_p11, %p5416_p2  ;;  %p4427_p10 = por %p4426_p8, %p4425_p5 }
  0x38   : > { %p4421_p9 = pneg %p4420_p13 }
  0x3a   : > { %p4428_p0 = pnand %p4427_p10, %p4421_p9 }
  0x3c   : > { %4431 = shalt.err (!%p4428_p0)
}
  0x3d   : > { %s5411_s16 = smov 128   ;;  %s5414_s17 = smov 8  }
  0x3e   : > { %4198 = dma.hbm_to_vmem [thread:$0]  (!%p4759_p12), %s5448_s19, 512, %s528_s25, [#allocation4], %s5411_s16, %s5411_s16, %s5414_s17  }
  0x3f   : > { %s4797_s29 = sshll.u32 %s598_s1, 5  ;;  %s5413_s27 = sshll.u32 %s4592_s30, 9 }
  0x40   : > { %s5449_s8 = sld [smem:[#allocation25_spill]]  ;;  %s600_s14 = scalar_lea.vmem [#allocation8], %s4797_s29 }
  0x41   : > { %s607_s13 = sshll.u32 %s600_s14, 4  ;;  %s4597_s18 = smov [#allocation6]   ;;  %s4808_s13 = int_to_ptr.vmem [resolvable:$true] %s607_s13 }
  0x42   : > { %s4810_s25 = sshll.u32 %s4597_s18, 4  ;;  %s5450_s1 = sand.u32 1, %s4592_s30   ;;  %s541_s25 = int_to_ptr.vmem [resolvable:$true] %s4810_s25 }
  0x43   : > { %s4814_s21 = scalar_lea.sflag [#allocation4], %s5450_s1  ;;  %p5451_p8 = scmp.ne.s32.totalorder %s5447_s20, 0 }
  0x45   : > { %p5418_p9 = pneg %p5451_p8 }
  0x46   : > { %s4805_s15 = scalar_lea.hbm %s5449_s8, %s5413_s27  ;;  %s4437_s14 = scalar_lea.hbm %s5449_s8, 1024 }
  0x47   : > { %s4432_s16 = scalar_lea.hbm %s4805_s15, 512  ;;  %p4438_p1 = scmp.lt.u32.totalorder %s4805_s15, %s5449_s8 }
  0x48   : > { %p4433_p5 = scmp.ne.s32.totalorder %s4805_s15, %s4432_s16  ;;  %p4439_p3 = scmp.lt.u32.totalorder %s4437_s14, %s4432_s16 }
  0x49   : > { %p4441_p4 = scmp.lt.u32.totalorder %s4432_s16, %s4805_s15 }
  0x4a   : > { %p4435_p10 = pnand %p5418_p9, %p4433_p5  ;;  %p4440_p6 = por %p4439_p3, %p4438_p1 }
  0x4c   : > { %p4436_p0 = pneg %p4435_p10  ;;  %p4442_p7 = por %p4441_p4, %p4440_p6 }
  0x4e   : > { %p4443_p11 = pnand %p4442_p7, %p4436_p0 }
  0x50   : > { %4446 = shalt.err (!%p4443_p11)
}
  0x51   : > { %s4447_s18 = scalar_lea.vmem %s4808_s13, 512  ;;  %s4598_s1 = smov [#allocation8]  }
  0x52   : > { %p4448_p13 = scmp.ne.s32.totalorder %s4808_s13, %s4447_s18  ;;  %s4452_s24 = sshll.u32 %s4598_s1, 4  ;;  %s4453_s24 = int_to_ptr.vmem [resolvable:$false] %s4452_s24 }
  0x53   : > { %s4454_s17 = scalar_lea.vmem %s4453_s24, 1024  ;;  %p4455_p2 = scmp.lt.s32.totalorder %s4808_s13, %s4453_s24 }
  0x54   : > { %p4450_p5 = pnand %p4448_p13, %p5418_p9  ;;  %p4456_p1 = scmp.lt.s32.totalorder %s4454_s17, %s4447_s18 }
  0x56   : > { %p4451_p10 = pneg %p4450_p5  ;;  %p4457_p3 = por %p4456_p1, %p4455_p2 }
  0x58   : > { %p4458_p6 = pnand %p4457_p3, %p4451_p10 }
  0x5a   : > { %4461 = shalt.err (!%p4458_p6)
}
  0x5b   : > { %s5452_s16 = smov 8   ;;  %s5453_s27 = smov 128  }
  0x5c   : > { %4205 = dma.hbm_to_vmem [thread:$0]  (!%p5451_p8), %s4805_s15, 512, %s4808_s13, %s4814_s21, %s5453_s27, %s5453_s27, %s5452_s16  }
  0x5d   : > { %s5454_s1 = sld [smem:[#allocation21_spill]]  ;;  %p5455_p0 = pneg %p4759_p12 }
  0x63   : > { %s4462_s24 = scalar_lea.hbm %s5454_s1, 512 }
  0x64   : > { %p4463_p2 = scmp.ne.s32.totalorder %s5454_s1, %s4462_s24  ;;  %p4469_p11 = scmp.lt.u32.totalorder %s4462_s24, %s5454_s1 }
  0x66   : > { %p4465_p4 = pnand %p4463_p2, %p5455_p0 }
  0x68   : > { %p4466_p7 = pneg %p4465_p4 }
  0x6a   : > { %p4471_p13 = pnand %p4469_p11, %p4466_p7 }
  0x6c   : > { %4474 = shalt.err (!%p4471_p13)
}
  0x6d   : > { %s4475_s13 = scalar_lea.vmem %s541_s25, 512  ;;  %p5456_p10 = pmov %p5455_p0 }
  0x6e   : > { %p4476_p5 = scmp.ne.s32.totalorder %s541_s25, %s4475_s13  ;;  %p4483_p6 = scmp.lt.s32.totalorder %s541_s25, %s541_s25 }
  0x6f   : > { %p4484_p9 = scmp.lt.s32.totalorder %s4475_s13, %s4475_s13 }
  0x70   : > { %p4478_p1 = pnand %p4476_p5, %p5456_p10 }
  0x71   : > { %p4485_p8 = por %p4484_p9, %p4483_p6 }
  0x72   : > { %p4479_p3 = pneg %p4478_p1 }
  0x74   : > { %p4486_p0 = pnand %p4485_p8, %p4479_p3 }
  0x76   : > { %4489 = shalt.err (!%p4486_p0)
}
  0x77   : > { %4201 = dma.hbm_to_vmem [thread:$0]  (!%p4759_p12), %s5454_s1, 512, %s541_s25, [#allocation7], %s5453_s27, %s5453_s27, %s5452_s16  }
  0x78   : > { %s5457_s19 = sshll.u32 %s4592_s30, 9  ;;  %s5458_s10 = sld [smem:[#allocation27_spill]] }
  0x79   : > { %s627_s26 = scalar_lea.vmem [#allocation9], %s4797_s29  ;;  %p5459_p9 = scmp.ne.s32.totalorder %s5447_s20, 0 }
  0x7a   : > { %s634_s18 = sshll.u32 %s627_s26, 4  ;;  %s4877_s18 = int_to_ptr.vmem [resolvable:$true] %s634_s18 }
  0x7b   : > { %p5460_p2 = pneg %p5459_p9 }
  0x7e   : > { %s4874_s24 = scalar_lea.hbm %s5458_s10, %s5457_s19  ;;  %s4495_s13 = scalar_lea.hbm %s5458_s10, 1024 }
  0x7f   : > { %s4490_s17 = scalar_lea.hbm %s4874_s24, 512  ;;  %p4496_p7 = scmp.lt.u32.totalorder %s4874_s24, %s5458_s10 }
  0x80   : > { %p4491_p8 = scmp.ne.s32.totalorder %s4874_s24, %s4490_s17  ;;  %p4497_p11 = scmp.lt.u32.totalorder %s4495_s13, %s4490_s17 }
  0x81   : > { %p4499_p5 = scmp.lt.u32.totalorder %s4490_s17, %s4874_s24 }
  0x82   : > { %p4493_p4 = pnand %p4491_p8, %p5460_p2  ;;  %p4498_p13 = por %p4497_p11, %p4496_p7 }
  0x84   : > { %p4494_p12 = pneg %p4493_p4  ;;  %p4500_p10 = por %p4499_p5, %p4498_p13 }
  0x86   : > { %p4501_p1 = pnand %p4500_p10, %p4494_p12 }
  0x88   : > { %4504 = shalt.err (!%p4501_p1)
}
  0x89   : > { %s4505_s29 = scalar_lea.vmem %s4877_s18, 512  ;;  %p5461_p6 = pmov %p5460_p2 }
  0x8a   : > { %p4506_p3 = scmp.ne.s32.totalorder %s4877_s18, %s4505_s29  ;;  %s4599_s19 = smov [#allocation9]  }
  0x8b   : > { %s4510_s22 = sshll.u32 %s4599_s19, 4  ;;  %s4511_s22 = int_to_ptr.vmem [resolvable:$false] %s4510_s22 }
  0x8c   : > { %p4508_p0 = pnand %p4506_p3, %p5461_p6  ;;  %s4512_s14 = scalar_lea.vmem %s4511_s22, 1024 }
  0x8d   : > { %p4513_p2 = scmp.lt.s32.totalorder %s4877_s18, %s4511_s22  ;;  %p4514_p4 = scmp.lt.s32.totalorder %s4512_s14, %s4505_s29 }
  0x8e   : > { %p4509_p8 = pneg %p4508_p0 }
  0x8f   : > { %p4515_p7 = por %p4514_p4, %p4513_p2 }
  0x91   : > { %p4516_p11 = pnand %p4515_p7, %p4509_p8 }
  0x93   : > { %4519 = shalt.err (!%p4516_p11)
}
  0x94   : > { %4208 = dma.hbm_to_vmem [thread:$0]  (!%p5459_p9), %s4874_s24, 512, %s4877_s18, %s4814_s21, %s5453_s27, %s5453_s27, %s5452_s16  }
  0x95   : > { %p5462_p12 = scmp.ne.s32.totalorder %s5445_s23, 0 }
  0x97   : > { %690 = sbr.rel (%p5462_p12) target bundleno = 4331 (0x10eb), region = 92 }
  0x9e   : > { %p5463_p13 = scmp.eq.s32.totalorder %s4722_s0, 0 }
  0xa0   : > { %4563 = dma.done.wait (%p5463_p13), [#allocation4], 512   ;;  %p5464_p5 = pmov %p5463_p13 }
  0xa2   : > { %4565 = vsyncadd (%p5464_p5), [#allocation4], 4294966784  ;;  %p5465_p10 = pmov %p5464_p5 }
  0xa3   : > { %p5466_p1 = pmov %p5464_p5 }
  0xa4   : > { %4567 = dma.done.wait (%p5465_p10), [#allocation7], 512  }
  0xa5   : > { %4569 = vsyncadd (%p5466_p1), [#allocation7], 4294966784  ;;  %s700_s20 = sand.u32 1, %s4722_s0   ;;  %s702_s21 = sand.u32 1, %s4584_s28  }
  0xa6   : > { %s3619_s16 = sshll.u32 %s702_s21, 5  ;;  %s701_s23 = scalar_lea.sflag [#allocation4], %s700_s20 }
  0xa7   : > { %s4918_s27 = scalar_lea.vmem [#allocation8], %s3619_s16  ;;  %p5468_p9 = scmp.ne.s32.totalorder %s5444_s2, 0 }
  0xa8   : > { %5467 = sst [smem:[#allocation19_spill]] %s4918_s27 }
  0xa9   : > { %4571 = dma.done.wait (%p5468_p9), %s701_s23, 1024  }
  0xaa   : > { %4573 = vsyncadd (%p5468_p9), %s701_s23, 4294966272  ;;  %p816_p3 = scmp.lt.s32.totalorder %s4722_s0, 1  ;;  %s5469_s13 = sld [smem:[#allocation22_spill]] }
  0xab   : > { %s5470_s3 = sld [smem:[#allocation23_spill]]  ;;  %s5471_s4 = sld [smem:[#allocation24_spill]] }
  0xac   : > { %s4926_s24 = scalar_select %p816_p3, %s4722_s0, 1 }
  0xad   : > { %s5474_s12 = sld [smem:[#allocation29_spill]]  ;;  %s5475_s1 = sld [smem:[#allocation30_spill]] }
  0xae   : > { %s3719_s26 = sshll.u32 %s4926_s24, 5  ;;  %s3722_s10 = sshll.u32 %s4926_s24, 6 }
  0xaf   : > { %s5476_s17 = sld [smem:[#allocation31_spill]]  ;;  %p5480_p6 = scmp.ne.s32.totalorder %s4722_s0, 0 }
  0xb0   : > { %s820_s8 = scalar_lea.vmem %s5469_s13, %s3719_s26  ;;  %s5477_s13 = sld [smem:[#allocation32_spill]]  ;;  %v870_v0 = vld [vmem:[#allocation3] sm:$0xff] (!%p5480_p6)  ;;  %vm874_vm0 = vcmask (!%p5480_p6), 261120   ;;  %v871_v1 = vld [vmem:[#allocation3 + $0x8] sm:$0xff] (!%p5480_p6)  ;;  %v872_v2 = vld [vmem:[#allocation3 + $0x10] sm:$0xff] (!%p5480_p6) }
  0xb1   : > { %s4939_s19 = scalar_lea.vmem %s5470_s3, %s3719_s26  ;;  %s4944_s20 = scalar_lea.vmem %s5471_s4, %s3719_s26  ;;  %875 = vst.msk [vmem:[#allocation2] sm:$0xff] (!%p5480_p6), %vm874_vm0, %v870_v0  ;;  %876 = vst.msk [vmem:[#allocation2 + $0x8] sm:$0xff] (!%p5480_p6), %vm874_vm0, %v871_v1  ;;  %v873_v3 = vld [vmem:[#allocation3 + $0x18] sm:$0xff] (!%p5480_p6) }
  0xb2   : > { %s5478_s3 = sld [smem:[#allocation33_spill]]  ;;  %877 = vst.msk [vmem:[#allocation2 + $0x10] sm:$0xff] (!%p5480_p6), %vm874_vm0, %v872_v2  ;;  %878 = vst.msk [vmem:[#allocation2 + $0x18] sm:$0xff] (!%p5480_p6), %vm874_vm0, %v873_v3 }
  0xb3   : > { %s4966_s14 = scalar_lea.vmem %s5474_s12, %s3722_s10  ;;  %s853_s4 = scalar_lea.vmem %s5475_s1, %s4926_s24 }
  0xb4   : > { %s5479_s10 = sld [smem:[#allocation34_spill]]  ;;  %s4988_s12 = scalar_lea.vmem [#allocation9], %s3619_s16 }
  0xb5   : > { %s856_s28 = scalar_lea.vmem %s5476_s17, %s4926_s24  ;;  %869 = sbr.rel (%p5480_p6) target bundleno = 188 (0xbc), region = 112 }
  0xb6   : > { %s859_s9 = scalar_lea.vmem %s5477_s13, %s4926_s24 }
  0xb8   : > { %s862_s11 = scalar_lea.vmem %s5478_s3, %s4926_s24 }
  0xba   : > { %s865_s26 = scalar_lea.vmem %s5479_s10, %s4926_s24 }
  0xbc PF: > { %v887_v4 = vld [vmem:[%s820_s8] sm:$0xff]  ;;  %v888_v5 = vld [vmem:[%s820_s8 + $0x8] sm:$0xff]  ;;  %v889_v6 = vld [vmem:[%s820_s8 + $0x10] sm:$0xff]  ;;  %vm935_vm1 = vcmask 261120   ;;  %s5481_s16 = scalar_lea.vmem %s5387_s5, %s4926_s24  ;;  %vm1227_vm2 = vcmask 64512   ;;  %s5485_s13 = scalar_lea.vmem %s5389_s7, %s4926_s24  ;;  %vm1406_vm4 = vcmask 130048  }
  0xbd   : > { %v4043_v7 = vpack.c.bf16 %v888_v5, %v887_v4  ;;  %v890_v8 = vld [vmem:[%s820_s8 + $0x18] sm:$0xff]  ;;  %v879_v9 = vld [vmem:[#allocation2] sm:$0xff]  ;;  %v880_v14 = vld [vmem:[#allocation2 + $0x8] sm:$0xff]  ;;  %s5482_s8 = scalar_lea.vmem %s5388_s6, %s4926_s24  ;;  %s4600_s21 = smov 120   ;;  %vm2885_vm5 = vcmask 195584   ;;  %vm3183_vm6 = vcmask 523264  }
  0xbe   : > { %v883_v10 = vld [vmem:[#allocation6] sm:$0xff]  ;;  %v4047_v11 = vpack.c.bf16 %v890_v8, %v889_v6  ;;  %3875 = vmatprep.mubr.msk.f32.mxu0 %vm935_vm1, %v879_v9  ;;  %v892_v15 = vld [vmem:[%s4939_s19 + $0x8] sm:$0xff]  ;;  %v881_v17 = vld [vmem:[#allocation2 + $0x10] sm:$0xff]  ;;  %s4601_s23 = smov 112   ;;  %s4602_s2 = smov 104  }
  0xbf   : > { %v925_v12 = vadd.f32 %v883_v10, %v879_v9  ;;  %v891_v13 = vld [vmem:[%s4939_s19] sm:$0xff]  ;;  %4044 = vmatprep.subr.bf16.mxu1 %v4043_v7  ;;  %v884_v16 = vld [vmem:[#allocation6 + $0x8] sm:$0xff]  ;;  %v885_v18 = vld [vmem:[#allocation6 + $0x10] sm:$0xff]  ;;  %s4603_s18 = smov 8   ;;  %s4604_s30 = smov 16  }
  0xc0   : > { %4046 = vmatpush3.bf16.msra.mxu1 %v4043_v7  ;;  %v4051_v19 = vpack.c.bf16 %v892_v15, %v891_v13  ;;  %v893_v20 = vld [vmem:[%s4939_s19 + $0x10] sm:$0xff]  ;;  %v895_v21 = vld [vmem:[%s4944_s20] sm:$0xff]  ;;  %v896_v22 = vld [vmem:[%s4944_s20 + $0x8] sm:$0xff]  ;;  %v926_v27 = vadd.f32 %v884_v16, %v880_v14  ;;  %v927_v29 = vadd.f32 %v885_v18, %v881_v17  ;;  %s5486_s25 = sld [smem:[#allocation19_spill]]  ;;  %s4605_s15 = smov 24  }
  0xc1   : > { %3847 = vmatprep.mubr.msk.f32.mxu1 %vm935_vm1, %v925_v12  ;;  %4048 = vmatprep.subr.bf16.mxu1 %v4047_v11  ;;  %v894_v23 = vld [vmem:[%s4939_s19 + $0x18] sm:$0xff]  ;;  %v4059_v24 = vpack.c.bf16 %v896_v22, %v895_v21  ;;  %v897_v25 = vld [vmem:[%s4944_s20 + $0x10] sm:$0xff]  ;;  %v3630_v34 = vld [vmem:[%s5481_s16] ss:$0 sm:$0xff]  ;;  %s5487_s10 = sld [smem:[#allocation26_spill]]  ;;  %s5491_s19 = sld [smem:[#allocation28_spill]] }
  0xc2   : > { %v898_v26 = vld [vmem:[%s4944_s20 + $0x18] sm:$0xff]  ;;  %v4055_v32 = vpack.c.bf16 %v894_v23, %v893_v20  ;;  %v3635_v41 = vld [vmem:[%s5482_s8] ss:$0 sm:$0xff]  ;;  %vm5032_vm3 = vmpackc.low %vm1227_vm2, %vm1227_vm2  ;;  %p3712_p0 = scmp.ne.s32.totalorder %s4722_s0, 1 }
  0xc3   : > { %v4063_v28 = vpack.c.bf16 %v898_v26, %v897_v25  ;;  %v882_v30 = vld [vmem:[#allocation2 + $0x18] sm:$0xff]  ;;  %4060 = vmatprep.subr.bf16.mxu0 %v4059_v24  ;;  %v3640_v61 = vld [vmem:[%s5485_s13] ss:$0 sm:$0xff] }
  0xc4   : > { %4050 = vmatpush3.bf16.msra.mxu1 %v4047_v11  ;;  %v886_v31 = vld [vmem:[#allocation6 + $0x18] sm:$0xff]  ;;  %4062 = vmatpush3.bf16.msra.mxu0 %v4059_v24 }
  0xc5   : > { %4052 = vmatprep.subr.bf16.mxu1 %v4051_v19  ;;  %4064 = vmatprep.subr.bf16.mxu0 %v4063_v28  ;;  %v928_v33 = vadd.f32 %v886_v31, %v882_v30 }
  0xc7   : > { %3848 = vmatmul.mubr.msk.f32.vlgmr.msra.gmra.mrb[0].mxu1 %vm935_vm1, %v926_v27  ;;  %s5488_s3 = scalar_lea.vmem %s5487_s10, %s4926_s24  ;;  %s5492_s20 = scalar_lea.vmem %s5491_s19, %s4926_s24 }
  0xc8   : > { %4054 = vmatpush3.bf16.msra.mxu1 %v4051_v19  ;;  %3850 = vmatprep.mubr.msk.f32.mxu1 %vm935_vm1, %v927_v29 }
  0xc9   : > { %4056 = vmatprep.subr.bf16.mxu1 %v4055_v32  ;;  %4066 = vmatpush3.bf16.msra.mxu0 %v4063_v28 }
  0xcb   : > { %3851 = vmatmul.mubr.msk.f32.gmra.mrb[2].mxu1 %vm935_vm1, %v928_v33 }
  0xcc   : > { %4058 = vmatpush3.bf16.msra.mxu1 %v4055_v32  ;;  %3861 = vmatprep.mubr.msk.f32.mxu1 %vm935_vm1, %v925_v12 }
  0xcd   : > { %3876 = vmatmul.mubr.msk.f32.vlgmr.msra.gmra.mrb[0].mxu0 %vm935_vm1, %v880_v14 }
  0xce   : > { %3878 = vmatprep.mubr.msk.f32.mxu0 %vm935_vm1, %v881_v17 }
  0xcf   : > { %3862 = vmatmul.mubr.msk.f32.vlgmr.msra.gmra.mrb[4].mxu1 %vm935_vm1, %v926_v27 }
  0xd0   : > { %3864 = vmatprep.mubr.msk.f32.mxu1 %vm935_vm1, %v927_v29 }
  0xd1   : > { %3879 = vmatmul.mubr.msk.f32.gmra.mrb[2].mxu0 %vm935_vm1, %v882_v30 }
  0xd3   : > { %3865 = vmatmul.mubr.msk.f32.gmra.mrb[6].mxu1 %vm935_vm1, %v928_v33 }
 0x19a   : > { %v3849_v35 = vpop.f32.mrb[0].mxu1 }
 0x19b   : > { %v1014_v36 = vpop.f32.mrb[1].mxu1  ;;  %v5048_v59 = vadd.f32 %v3849_v35, %v3630_v34 }
 0x19c   : > { %v5017_v37 = vadd.f32 %v3630_v34, %v1014_v36 }
 0x19e   : > { %v3852_v38 = vpop.f32.mrb[2].mxu1  ;;  %3885 = vmatprep.mubr.msk.f32.mxu1 %vm1227_vm2, %v5017_v37 }
 0x19f   : > { %v1024_v39 = vpop.f32.mrb[3].mxu1  ;;  %v5052_v60 = vadd.f32 %v3852_v38, %v3630_v34 }
 0x1a0   : > { %v5021_v40 = vadd.f32 %v3630_v34, %v1024_v39  ;;  %v3877_v42 = vpop.f32.mrb[0].mxu0 }
 0x1a1   : > { %v1208_v43 = vpop.f32.mrb[1].mxu0  ;;  %v1214_v62 = vadd.f32 %v3877_v42, %v3640_v61 }
 0x1a2   : > { %v3863_v44 = vpop.f32.mrb[4].mxu1  ;;  %3892 = vmatprep.mubr.msk.f32.mxu0 %vm1227_vm2, %v5021_v40  ;;  %v1209_v63 = vadd.f32 %v3640_v61, %v1208_v43 }
 0x1a3   : > { %v1111_v45 = vadd.f32 %v3863_v44, %v3635_v41  ;;  %v1105_v46 = vpop.f32.mrb[5].mxu1 }
 0x1a4   : > { %v1106_v47 = vadd.f32 %v3635_v41, %v1105_v46  ;;  %v3880_v48 = vpop.f32.mrb[2].mxu0  ;;  %v4079_v0 = vpack.c.bf16 %v1214_v62, %v1209_v63  ;;  %v5061_v3 = vpack.i.bf16 %v1214_v62, %v1209_v63 }
 0x1a5   : > { %v1218_v50 = vpop.f32.mrb[3].mxu0  ;;  %v1224_v1 = vadd.f32 %v3880_v48, %v3640_v61 }
 0x1a6   : > { %v3866_v51 = vpop.f32.mrb[6].mxu1  ;;  %v4067_v52 = vpack.c.bf16 %v1111_v45, %v1106_v47  ;;  %v5036_v53 = vpack.i.bf16 %v1111_v45, %v1106_v47  ;;  %v1219_v2 = vadd.f32 %v3640_v61, %v1218_v50 }
 0x1a7   : > { %v1121_v54 = vadd.f32 %v3866_v51, %v3635_v41  ;;  %v1115_v55 = vpop.f32.mrb[7].mxu1 }
 0x1a8   : > { %v1116_v56 = vadd.f32 %v3635_v41, %v1115_v55  ;;  %4069 = vmatprep.subr.msk.bf16.mxu1 %vm5032_vm3, %v4067_v52  ;;  %v5063_v4 = vpack.c.bf16 %v1224_v1, %v1219_v2  ;;  %v5066_v5 = vpack.i.bf16 %v1224_v1, %v1219_v2 }
 0x1a9   : > { %4072 = vmatpush3.bf16.xpose.msk.msra.mxu1 %vm5032_vm3, %v4067_v52 }
 0x1aa   : > { %v4073_v57 = vpack.c.bf16 %v1121_v54, %v1116_v56  ;;  %v5042_v58 = vpack.i.bf16 %v1121_v54, %v1116_v56  ;;  %4080 = vmatprep.subr.bf16.mxu1 %v4079_v0 }
 0x1ac   : > { %4075 = vmatprep.subr.msk.bf16.mxu0 %vm5032_vm3, %v4073_v57 }
 0x1ad   : > { %4078 = vmatpush3.bf16.xpose.msk.msra.mxu0 %vm5032_vm3, %v4073_v57 }
 0x1b0   : > { %3886 = vmatmul.mubr.msk.f32.vlgmr.msra.gmra.mrb[8].mxu1 %vm1227_vm2, %v5048_v59 }
 0x1b1   : > { %4082 = vmatpush3.bf16.msra.mxu1 %v4079_v0 }
 0x1b2   : > { %4084 = vmatprep.subr.bf16.mxu1 %v5063_v4 }
 0x1b4   : > { %3893 = vmatmul.mubr.msk.f32.vlgmr.msra.gmra.mrb[4].mxu0 %vm1227_vm2, %v5052_v60 }
 0x283   : > { %v3887_v6 = vpop.f32.mrb[8].mxu1 }
 0x284   : > { %v1306_v7 = vpop.f32.mrb[9].mxu1  ;;  %v1403_v9 = vmul.f32 0.35355338, %v3887_v6 }
 0x285   : > { %v1402_v8 = vmul.f32 0.35355338, %v1306_v7 }
 0x286   : > { %v1410_v16 = vsel %vm1406_vm4, %v1403_v9, -inf }
 0x287   : > { %v3894_v10 = vpop.f32.mrb[4].mxu0  ;;  %v1407_v11 = vsel %vm1406_vm4, %v1402_v8, -inf }
 0x288   : > { %v1393_v12 = vpop.f32.mrb[5].mxu0  ;;  %1408 = vmax.xlane.f32.xlu0 %v1407_v11  ;;  %v1405_v14 = vmul.f32 0.35355338, %v3894_v10 }
 0x289   : > { %v1404_v13 = vmul.f32 0.35355338, %v1393_v12 }
 0x28a   : > { %v1416_v17 = vsel %vm1406_vm4, %v1405_v14, -inf }
 0x28b   : > { %v1413_v15 = vsel %vm1406_vm4, %v1404_v13, -inf }
 0x28c   : > { %1414 = vmax.xlane.f32.xlu1 %v1413_v15  ;;  %1411 = vmax.xlane.f32.xlu0 %v1410_v16 }
 0x290   : > { %1417 = vmax.xlane.f32.xlu1 %v1416_v17 }
 0x315   : > { %v1409_v18 = vpop.xlane.xlu0 %1408 }
 0x316   : > { %v1419_v19 = vsub.f32 %v1402_v8, %v1409_v18 }
 0x318   : > { %v1423_v20 = vmul.f32 1.442695, %v1419_v19 }
 0x319   : > { %v1415_v21 = vpop.xlane.xlu1 %1414  ;;  %v1412_v22 = vpop.xlane.xlu0 %1411 }
 0x31a   : > { %4320 = vpow2.f32 %v1423_v20  ;;  %v1421_v23 = vsub.f32 %v1404_v13, %v1415_v21  ;;  %v1420_v24 = vsub.f32 %v1403_v9, %v1412_v22 }
 0x31c   : > { %v1427_v25 = vmul.f32 1.442695, %v1421_v23  ;;  %v1425_v26 = vmul.f32 1.442695, %v1420_v24 }
 0x31d   : > { %v1418_v27 = vpop.xlane.xlu1 %1417 }
 0x31e   : > { %4322 = vpow2.f32 %v1427_v25  ;;  %v1422_v28 = vsub.f32 %v1405_v14, %v1418_v27 }
 0x31f   : > { %4324 = vpow2.f32 %v1425_v26 }
 0x320   : > { %v1429_v29 = vmul.f32 1.442695, %v1422_v28 }
 0x322   : > { %4326 = vpow2.f32 %v1429_v29 }
 0x324   : > { %v4321_v30 = vpop.eup %4320 }
 0x325   : > { %v1431_v31 = vsel %vm1406_vm4, %v4321_v30, 0.0 }
 0x326   : > { %1432 = vadd.xlane.f32.xlu0 %v1431_v31 }
 0x328   : > { %v4323_v32 = vpop.eup %4322 }
 0x329   : > { %v4325_v33 = vpop.eup %4324  ;;  %v1437_v34 = vsel %vm1406_vm4, %v4323_v32, 0.0 }
 0x32a   : > { %1438 = vadd.xlane.f32.xlu0 %v1437_v34  ;;  %v1434_v35 = vsel %vm1406_vm4, %v4325_v33, 0.0 }
 0x32b   : > { %1435 = vadd.xlane.f32.xlu1 %v1434_v35 }
 0x32c   : > { %v4327_v36 = vpop.eup %4326 }
 0x32d   : > { %v1440_v38 = vsel %vm1406_vm4, %v4327_v36, 0.0 }
 0x32f   : > { %1441 = vadd.xlane.f32.xlu1 %v1440_v38 }
 0x340   : > { %4266 = vrot.lane.b32.xlu1 %v5042_v58, %s4600_s21  ;;  %4261 = vrot.lane.b32.xlu0 %v5036_v53, %s4600_s21 }
 0x344   : > { %1613 = vrot.lane.b32.xlu1 %v5017_v37, %s4600_s21  ;;  %1704 = vrot.lane.b32.xlu0 %v5021_v40, %s4600_s21 }
 0x348   : > { %1615 = vrot.lane.b32.xlu1 %v5048_v59, %s4600_s21 }
 0x34c   : > { %1706 = vrot.lane.b32.xlu1 %v5052_v60, %s4600_s21 }
 0x3b3   : > { %v1433_v39 = vpop.xlane.xlu0 %1432 }
 0x3b4   : > { %4328 = vrcp.f32 %v1433_v39 }
 0x3b7   : > { %v1439_v41 = vpop.xlane.xlu0 %1438 }
 0x3b8   : > { %v1436_v42 = vpop.xlane.xlu1 %1435  ;;  %4330 = vrcp.f32 %v1439_v41 }
 0x3b9   : > { %4332 = vrcp.f32 %v1436_v42 }
 0x3bb   : > { %v4262_v43 = vpop.permute.xlu0 %4261 }
 0x3bc   : > { %v1442_v44 = vpop.xlane.xlu1 %1441  ;;  %v4264_v45 = vunpack.i.h.bf16 %v4262_v43  ;;  %v4263_v46 = vunpack.i.l.bf16 %v4262_v43 }
 0x3bd   : > { %4334 = vrcp.f32 %v1442_v44 }
 0x3be   : > { %v4329_v47 = vpop.eup %4328  ;;  %v4087_v48 = vpack.c.bf16 %v4264_v45, %v4263_v46 }
 0x3bf   : > { %v1447_v50 = vmul.f32 %v4329_v47, %v4321_v30  ;;  %v1705_v6 = vpop.permute.xlu0 %1704 }
 0x3c0   : > { %v4267_v51 = vpop.permute.xlu1 %4266  ;;  %4089 = vmatprep.subr.msk.bf16.mxu0 %vm5032_vm3, %v4087_v48 }
 0x3c1   : > { %3899 = vmatprep.mubr.msk.f32.mxu1 %vm1406_vm4, %v1447_v50  ;;  %4092 = vmatpush3.bf16.xpose.msk.msra.mxu0 %vm5032_vm3, %v4087_v48  ;;  %v4269_v54 = vunpack.i.h.bf16 %v4267_v51  ;;  %v4268_v55 = vunpack.i.l.bf16 %v4267_v51 }
 0x3c2   : > { %v4331_v52 = vpop.eup %4330 }
 0x3c3   : > { %v4333_v56 = vpop.eup %4332  ;;  %v1449_v57 = vmul.f32 %v4331_v52, %v4323_v32  ;;  %v4093_v63 = vpack.c.bf16 %v4269_v54, %v4268_v55 }
 0x3c4   : > { %v1448_v61 = vmul.f32 %v4333_v56, %v4325_v33  ;;  %v1614_v62 = vpop.permute.xlu1 %1613 }
 0x3c5   : > { %3913 = vmatprep.mubr.msk.f32.mxu0 %vm1227_vm2, %v1614_v62 }
 0x3c6   : > { %3900 = vmatmul.mubr.msk.f32.vlgmr.msra.gmra.mrb[10].mxu1 %vm1406_vm4, %v1448_v61 }
 0x3c7   : > { %v4335_v0 = vpop.eup %4334  ;;  %4086 = vmatpush3.bf16.msra.mxu1 %v5063_v4  ;;  %3906 = vmatprep.mubr.msk.f32.mxu1 %vm1406_vm4, %v1449_v57 }
 0x3c8   : > { %v1450_v1 = vmul.f32 %v4335_v0, %v4327_v36  ;;  %4095 = vmatprep.subr.msk.bf16.mxu1 %vm5032_vm3, %v4093_v63  ;;  %v1616_v2 = vpop.permute.xlu1 %1615 }
 0x3c9   : > { %3914 = vmatmul.mubr.msk.f32.vlgmr.msra.gmra.mrb[6].mxu0 %vm1227_vm2, %v1616_v2 }
 0x3ca   : > { %3907 = vmatmul.mubr.msk.f32.vlgmr.msra.gmra.mrb[12].mxu1 %vm1406_vm4, %v1450_v1 }
 0x3cb   : > { %3920 = vmatprep.mubr.msk.f32.mxu1 %vm1227_vm2, %v1705_v6 }
 0x3cc   : > { %v1707_v7 = vpop.permute.xlu1 %1706 }
 0x3d0   : > { %4098 = vmatpush3.bf16.xpose.msk.msra.mxu1 %vm5032_vm3, %v4093_v63 }
 0x3d7   : > { %3921 = vmatmul.mubr.msk.f32.vlgmr.msra.gmra.mrb[14].mxu1 %vm1227_vm2, %v1707_v7 }
 0x499   : > { %v5105_v4 = vpop.f32.mrb[10].mxu1 }
 0x49a   : > { %v5107_v8 = vpop.f32.mrb[11].mxu1 }
 0x49c   : > { %v3915_v9 = vpop.f32.mrb[6].mxu0 }
 0x49d   : > { %v1796_v10 = vmul.f32 0.35355338, %v3915_v9  ;;  %v5109_v11 = vpop.f32.mrb[12].mxu1  ;;  %v1695_v12 = vpop.f32.mrb[7].mxu0 }
 0x49e   : > { %v1795_v13 = vmul.f32 0.35355338, %v1695_v12  ;;  %v5111_v14 = vpop.f32.mrb[13].mxu1 }
 0x49f   : > { %v1802_v15 = vsel %vm1406_vm4, %v1796_v10, -inf }
 0x4a0   : > { %1803 = vmax.xlane.f32.xlu1 %v1802_v15  ;;  %v1799_v16 = vsel %vm1406_vm4, %v1795_v13, -inf }
 0x4a1   : > { %1800 = vmax.xlane.f32.xlu0 %v1799_v16 }
 0x4aa   : > { %v3922_v17 = vpop.f32.mrb[14].mxu1 }
 0x4ab   : > { %v1786_v18 = vpop.f32.mrb[15].mxu1  ;;  %v1798_v20 = vmul.f32 0.35355338, %v3922_v17 }
 0x4ac   : > { %v1797_v19 = vmul.f32 0.35355338, %v1786_v18 }
 0x4ad   : > { %v1808_v22 = vsel %vm1406_vm4, %v1798_v20, -inf }
 0x4ae   : > { %v1805_v21 = vsel %vm1406_vm4, %v1797_v19, -inf }
 0x4af   : > { %1806 = vmax.xlane.f32.xlu0 %v1805_v21 }
 0x4b3   : > { %1809 = vmax.xlane.f32.xlu0 %v1808_v22 }
 0x52d   : > { %v1804_v23 = vpop.xlane.xlu1 %1803 }
 0x52e   : > { %v1812_v24 = vsub.f32 %v1796_v10, %v1804_v23  ;;  %v1801_v25 = vpop.xlane.xlu0 %1800 }
 0x52f   : > { %v1811_v26 = vsub.f32 %v1795_v13, %v1801_v25 }
 0x530   : > { %v1817_v27 = vmul.f32 1.442695, %v1812_v24 }
 0x531   : > { %v1815_v28 = vmul.f32 1.442695, %v1811_v26 }
 0x532   : > { %4336 = vpow2.f32 %v1817_v27 }
 0x533   : > { %4338 = vpow2.f32 %v1815_v28 }
 0x53c   : > { %v4337_v29 = vpop.eup %4336  ;;  %v1807_v33 = vpop.xlane.xlu0 %1806 }
 0x53d   : > { %v4339_v30 = vpop.eup %4338  ;;  %v1826_v31 = vsel %vm1406_vm4, %v4337_v29, 0.0  ;;  %v1813_v34 = vsub.f32 %v1797_v19, %v1807_v33 }
 0x53e   : > { %1827 = vadd.xlane.f32.xlu1 %v1826_v31  ;;  %v1823_v32 = vsel %vm1406_vm4, %v4339_v30, 0.0 }
 0x53f   : > { %1824 = vadd.xlane.f32.xlu0 %v1823_v32  ;;  %v1819_v35 = vmul.f32 1.442695, %v1813_v34 }
 0x540   : > { %v1810_v36 = vpop.xlane.xlu0 %1809 }
 0x541   : > { %v1814_v38 = vsub.f32 %v1798_v20, %v1810_v36  ;;  %4340 = vpow2.f32 %v1819_v35 }
 0x543   : > { %v1821_v39 = vmul.f32 1.442695, %v1814_v38 }
 0x545   : > { %4342 = vpow2.f32 %v1821_v39 }
 0x54b   : > { %v4341_v41 = vpop.eup %4340 }
 0x54c   : > { %v1829_v42 = vsel %vm1406_vm4, %v4341_v41, 0.0 }
 0x54f   : > { %4276 = vrot.lane.b32.xlu1 %v5066_v5, %s4600_s21  ;;  %v4343_v43 = vpop.eup %4342 }
 0x550   : > { %v1832_v44 = vsel %vm1406_vm4, %v4343_v43, 0.0 }
 0x553   : > { %4281 = vrot.lane.b32.xlu1 %v5036_v53, %s4601_s23 }
 0x555   : > { %4271 = vrot.lane.b32.xlu0 %v5061_v3, %s4600_s21 }
 0x557   : > { %4286 = vrot.lane.b32.xlu1 %v5042_v58, %s4601_s23 }
 0x574   : > { %1830 = vadd.xlane.f32.xlu0 %v1829_v42 }
 0x57b   : > { %1833 = vadd.xlane.f32.xlu1 %v1832_v44 }
 0x58a   : > { %2021 = vrot.lane.b32.xlu0 %v5017_v37, %s4601_s23 }
 0x58c   : > { %2023 = vrot.lane.b32.xlu1 %v5048_v59, %s4601_s23 }
 0x58e   : > { %2112 = vrot.lane.b32.xlu0 %v5021_v40, %s4601_s23 }
 0x590   : > { %2114 = vrot.lane.b32.xlu1 %v5052_v60, %s4601_s23 }
 0x5cb   : > { %v1828_v45 = vpop.xlane.xlu1 %1827 }
 0x5cc   : > { %4344 = vrcp.f32 %v1828_v45  ;;  %v1825_v46 = vpop.xlane.xlu0 %1824 }
 0x5cd   : > { %4346 = vrcp.f32 %v1825_v46 }
 0x5cf   : > { %v4277_v47 = vpop.permute.xlu1 %4276 }
 0x5d0   : > { %v4279_v48 = vunpack.i.h.bf16 %v4277_v47  ;;  %v4278_v50 = vunpack.i.l.bf16 %v4277_v47  ;;  %v4272_v51 = vpop.permute.xlu0 %4271 }
 0x5d1   : > { %v4274_v52 = vunpack.i.h.bf16 %v4272_v51  ;;  %v4273_v54 = vunpack.i.l.bf16 %v4272_v51 }
 0x5d2   : > { %v4103_v55 = vpack.c.bf16 %v4279_v48, %v4278_v50 }
 0x5d3   : > { %v4099_v56 = vpack.c.bf16 %v4274_v52, %v4273_v54  ;;  %v4282_v57 = vpop.permute.xlu1 %4281 }
 0x5d4   : > { %v4284_v61 = vunpack.i.h.bf16 %v4282_v57  ;;  %v4283_v62 = vunpack.i.l.bf16 %v4282_v57  ;;  %4104 = vmatprep.subr.bf16.mxu1 %v4103_v55 }
 0x5d5   : > { %4100 = vmatprep.subr.bf16.mxu0 %v4099_v56  ;;  %4106 = vmatpush3.bf16.msra.mxu1 %v4103_v55 }
 0x5d6   : > { %v4345_v63 = vpop.eup %4344  ;;  %v4107_v0 = vpack.c.bf16 %v4284_v61, %v4283_v62  ;;  %4102 = vmatpush3.bf16.msra.mxu0 %v4099_v56 }
 0x5d7   : > { %v4347_v1 = vpop.eup %4346  ;;  %v4287_v2 = vpop.permute.xlu1 %4286  ;;  %v1840_v10 = vmul.f32 %v4345_v63, %v4337_v29 }
 0x5d8   : > { %v4289_v6 = vunpack.i.h.bf16 %v4287_v2  ;;  %v4288_v7 = vunpack.i.l.bf16 %v4287_v2  ;;  %4109 = vmatprep.subr.msk.bf16.mxu0 %vm5032_vm3, %v4107_v0  ;;  %v1839_v9 = vmul.f32 %v4347_v1, %v4339_v30 }
 0x5da   : > { %v4113_v12 = vpack.c.bf16 %v4289_v6, %v4288_v7  ;;  %3927 = vmatprep.mubr.msk.f32.mxu0 %vm1406_vm4, %v1839_v9 }
 0x5db   : > { %3928 = vmatmul.mubr.msk.f32.vlgmr.msra.gmra.mrb[8].mxu0 %vm1406_vm4, %v1840_v10 }
 0x5dc   : > { %4115 = vmatprep.subr.msk.bf16.mxu1 %vm5032_vm3, %v4113_v12 }
 0x5df   : > { %4112 = vmatpush3.bf16.xpose.msk.msra.mxu0 %vm5032_vm3, %v4107_v0 }
 0x601   : > { %v1831_v13 = vpop.xlane.xlu0 %1830 }
 0x602   : > { %4348 = vrcp.f32 %v1831_v13 }
 0x605   : > { %v2022_v15 = vpop.permute.xlu0 %2021 }
 0x606   : > { %3941 = vmatprep.mubr.msk.f32.mxu0 %vm1227_vm2, %v2022_v15 }
 0x608   : > { %v1834_v16 = vpop.xlane.xlu1 %1833 }
 0x609   : > { %4350 = vrcp.f32 %v1834_v16  ;;  %v2113_v22 = vpop.permute.xlu0 %2112 }
 0x60c   : > { %v4349_v17 = vpop.eup %4348  ;;  %v2024_v18 = vpop.permute.xlu1 %2023 }
 0x60d   : > { %3942 = vmatmul.mubr.msk.f32.vlgmr.msra.gmra.mrb[10].mxu0 %vm1227_vm2, %v2024_v18  ;;  %v1841_v19 = vmul.f32 %v4349_v17, %v4341_v41 }
 0x60f   : > { %3934 = vmatprep.mubr.msk.f32.mxu1 %vm1406_vm4, %v1841_v19 }
 0x610   : > { %v2115_v23 = vpop.permute.xlu1 %2114 }
 0x613   : > { %v4351_v20 = vpop.eup %4350 }
 0x614   : > { %v1842_v21 = vmul.f32 %v4351_v20, %v4343_v43 }
 0x616   : > { %3935 = vmatmul.mubr.msk.f32.vlgmr.msra.gmra.mrb[16].mxu1 %vm1406_vm4, %v1842_v21 }
 0x617   : > { %4118 = vmatpush3.bf16.xpose.msk.msra.mxu1 %vm5032_vm3, %v4113_v12  ;;  %3948 = vmatprep.mubr.msk.f32.mxu1 %vm1227_vm2, %v2113_v22 }
 0x61e   : > { %3949 = vmatmul.mubr.msk.f32.vlgmr.msra.gmra.mrb[18].mxu1 %vm1227_vm2, %v2115_v23 }
 0x6ae   : > { %v5153_v24 = vpop.f32.mrb[8].mxu0 }
 0x6af   : > { %v5155_v25 = vpop.f32.mrb[9].mxu0 }
 0x6e0   : > { %v3943_v26 = vpop.f32.mrb[10].mxu0 }
 0x6e1   : > { %v2204_v27 = vmul.f32 0.35355338, %v3943_v26  ;;  %v2103_v28 = vpop.f32.mrb[11].mxu0 }
 0x6e2   : > { %v2203_v29 = vmul.f32 0.35355338, %v2103_v28 }
 0x6e3   : > { %v2210_v30 = vsel %vm1406_vm4, %v2204_v27, -inf }
 0x6e4   : > { %2211 = vmax.xlane.f32.xlu1 %v2210_v30  ;;  %v2207_v31 = vsel %vm1406_vm4, %v2203_v29, -inf }
 0x6e5   : > { %2208 = vmax.xlane.f32.xlu0 %v2207_v31 }
 0x6e9   : > { %v5159_v32 = vpop.f32.mrb[16].mxu1 }
 0x6ea   : > { %v5161_v33 = vpop.f32.mrb[17].mxu1 }
 0x6f1   : > { %v3950_v34 = vpop.f32.mrb[18].mxu1 }
 0x6f2   : > { %v2194_v35 = vpop.f32.mrb[19].mxu1  ;;  %v2206_v38 = vmul.f32 0.35355338, %v3950_v34 }
 0x6f3   : > { %v2205_v36 = vmul.f32 0.35355338, %v2194_v35 }
 0x6f4   : > { %v2216_v41 = vsel %vm1406_vm4, %v2206_v38, -inf }
 0x6f5   : > { %v2213_v39 = vsel %vm1406_vm4, %v2205_v36, -inf }
 0x6f6   : > { %2214 = vmax.xlane.f32.xlu0 %v2213_v39 }
 0x6fa   : > { %2217 = vmax.xlane.f32.xlu0 %v2216_v41 }
 0x771   : > { %v2212_v42 = vpop.xlane.xlu1 %2211 }
 0x772   : > { %v2220_v43 = vsub.f32 %v2204_v27, %v2212_v42  ;;  %v2209_v44 = vpop.xlane.xlu0 %2208 }
 0x773   : > { %v2219_v45 = vsub.f32 %v2203_v29, %v2209_v44 }
 0x774   : > { %v2225_v46 = vmul.f32 1.442695, %v2220_v43 }
 0x775   : > { %v2223_v47 = vmul.f32 1.442695, %v2219_v45 }
 0x776   : > { %4352 = vpow2.f32 %v2225_v46 }
 0x777   : > { %4354 = vpow2.f32 %v2223_v47 }
 0x780   : > { %v4353_v48 = vpop.eup %4352 }
 0x781   : > { %v4355_v50 = vpop.eup %4354  ;;  %v2234_v51 = vsel %vm1406_vm4, %v4353_v48, 0.0 }
 0x782   : > { %2235 = vadd.xlane.f32.xlu1 %v2234_v51  ;;  %v2231_v52 = vsel %vm1406_vm4, %v4355_v50, 0.0 }
 0x783   : > { %2232 = vadd.xlane.f32.xlu0 %v2231_v52  ;;  %v2215_v54 = vpop.xlane.xlu0 %2214 }
 0x784   : > { %v2221_v55 = vsub.f32 %v2205_v36, %v2215_v54 }
 0x786   : > { %v2227_v56 = vmul.f32 1.442695, %v2221_v55 }
 0x787   : > { %v2218_v57 = vpop.xlane.xlu0 %2217 }
 0x788   : > { %v2222_v61 = vsub.f32 %v2206_v38, %v2218_v57  ;;  %4356 = vpow2.f32 %v2227_v56 }
 0x78a   : > { %v2229_v62 = vmul.f32 1.442695, %v2222_v61 }
 0x78c   : > { %4358 = vpow2.f32 %v2229_v62 }
 0x792   : > { %v4357_v63 = vpop.eup %4356 }
 0x793   : > { %4296 = vrot.lane.b32.xlu1 %v5066_v5, %s4601_s23  ;;  %v2237_v0 = vsel %vm1406_vm4, %v4357_v63, 0.0 }
 0x796   : > { %v4359_v1 = vpop.eup %4358 }
 0x797   : > { %4301 = vrot.lane.b32.xlu1 %v5036_v53, %s4602_s2  ;;  %v2240_v53 = vsel %vm1406_vm4, %v4359_v1, 0.0 }
 0x799   : > { %4291 = vrot.lane.b32.xlu0 %v5061_v3, %s4601_s23 }
 0x79b   : > { %4306 = vrot.lane.b32.xlu1 %v5042_v58, %s4602_s2 }
 0x7b8   : > { %2238 = vadd.xlane.f32.xlu0 %v2237_v0 }
 0x7bf   : > { %2241 = vadd.xlane.f32.xlu1 %v2240_v53 }
 0x7ce   : > { %2425 = vrot.lane.b32.xlu0 %v5017_v37, %s4602_s2 }
 0x7d0   : > { %2427 = vrot.lane.b32.xlu1 %v5048_v59, %s4602_s2 }
 0x7d2   : > { %2516 = vrot.lane.b32.xlu0 %v5021_v40, %s4602_s2 }
 0x7d4   : > { %2518 = vrot.lane.b32.xlu1 %v5052_v60, %s4602_s2 }
 0x80f   : > { %v2236_v58 = vpop.xlane.xlu1 %2235 }
 0x810   : > { %4360 = vrcp.f32 %v2236_v58  ;;  %v2233_v2 = vpop.xlane.xlu0 %2232 }
 0x811   : > { %4362 = vrcp.f32 %v2233_v2 }
 0x813   : > { %v4297_v6 = vpop.permute.xlu1 %4296 }
 0x814   : > { %v4299_v7 = vunpack.i.h.bf16 %v4297_v6  ;;  %v4298_v9 = vunpack.i.l.bf16 %v4297_v6  ;;  %v4292_v10 = vpop.permute.xlu0 %4291 }
 0x815   : > { %v4294_v12 = vunpack.i.h.bf16 %v4292_v10  ;;  %v4293_v13 = vunpack.i.l.bf16 %v4292_v10 }
 0x816   : > { %v4123_v37 = vpack.c.bf16 %v4299_v7, %v4298_v9 }
 0x817   : > { %v4119_v15 = vpack.c.bf16 %v4294_v12, %v4293_v13  ;;  %v4302_v16 = vpop.permute.xlu1 %4301 }
 0x818   : > { %v4304_v59 = vunpack.i.h.bf16 %v4302_v16  ;;  %v4303_v17 = vunpack.i.l.bf16 %v4302_v16  ;;  %4124 = vmatprep.subr.bf16.mxu1 %v4123_v37 }
 0x819   : > { %4120 = vmatprep.subr.bf16.mxu0 %v4119_v15  ;;  %4126 = vmatpush3.bf16.msra.mxu1 %v4123_v37 }
 0x81a   : > { %v4361_v40 = vpop.eup %4360  ;;  %v4127_v60 = vpack.c.bf16 %v4304_v59, %v4303_v17  ;;  %4122 = vmatpush3.bf16.msra.mxu0 %v4119_v15 }
 0x81b   : > { %v4363_v18 = vpop.eup %4362  ;;  %v4307_v19 = vpop.permute.xlu1 %4306  ;;  %v2248_v23 = vmul.f32 %v4361_v40, %v4353_v48 }
 0x81c   : > { %v4309_v20 = vunpack.i.h.bf16 %v4307_v19  ;;  %v4308_v21 = vunpack.i.l.bf16 %v4307_v19  ;;  %4129 = vmatprep.subr.msk.bf16.mxu0 %vm5032_vm3, %v4127_v60  ;;  %v2247_v22 = vmul.f32 %v4363_v18, %v4355_v50 }
 0x81e   : > { %v4133_v26 = vpack.c.bf16 %v4309_v20, %v4308_v21  ;;  %3955 = vmatprep.mubr.msk.f32.mxu0 %vm1406_vm4, %v2247_v22 }
 0x81f   : > { %3956 = vmatmul.mubr.msk.f32.vlgmr.msra.gmra.mrb[12].mxu0 %vm1406_vm4, %v2248_v23 }
 0x820   : > { %4135 = vmatprep.subr.msk.bf16.mxu1 %vm5032_vm3, %v4133_v26 }
 0x823   : > { %4132 = vmatpush3.bf16.xpose.msk.msra.mxu0 %vm5032_vm3, %v4127_v60 }
 0x845   : > { %v2239_v27 = vpop.xlane.xlu0 %2238 }
 0x846   : > { %4364 = vrcp.f32 %v2239_v27 }
 0x849   : > { %v2426_v28 = vpop.permute.xlu0 %2425 }
 0x84a   : > { %3969 = vmatprep.mubr.msk.f32.mxu0 %vm1227_vm2, %v2426_v28 }
 0x84c   : > { %v2242_v29 = vpop.xlane.xlu1 %2241 }
 0x84d   : > { %4366 = vrcp.f32 %v2242_v29  ;;  %v2517_v38 = vpop.permute.xlu0 %2516 }
 0x850   : > { %v4365_v30 = vpop.eup %4364  ;;  %v2428_v31 = vpop.permute.xlu1 %2427 }
 0x851   : > { %3970 = vmatmul.mubr.msk.f32.vlgmr.msra.gmra.mrb[14].mxu0 %vm1227_vm2, %v2428_v31  ;;  %v2249_v34 = vmul.f32 %v4365_v30, %v4357_v63 }
 0x853   : > { %3962 = vmatprep.mubr.msk.f32.mxu1 %vm1406_vm4, %v2249_v34 }
 0x854   : > { %v2519_v39 = vpop.permute.xlu1 %2518 }
 0x857   : > { %v4367_v35 = vpop.eup %4366 }
 0x858   : > { %v2250_v36 = vmul.f32 %v4367_v35, %v4359_v1 }
 0x85a   : > { %3963 = vmatmul.mubr.msk.f32.vlgmr.msra.gmra.mrb[20].mxu1 %vm1406_vm4, %v2250_v36 }
 0x85b   : > { %4138 = vmatpush3.bf16.xpose.msk.msra.mxu1 %vm5032_vm3, %v4133_v26  ;;  %3976 = vmatprep.mubr.msk.f32.mxu1 %vm1227_vm2, %v2517_v38  ;;  %v899_v38 = vld [vmem:[%s5486_s25] sm:$0xff] }
 0x862   : > { %3977 = vmatmul.mubr.msk.f32.vlgmr.msra.gmra.mrb[22].mxu1 %vm1227_vm2, %v2519_v39  ;;  %v900_v39 = vld [vmem:[%s5486_s25 + $0x8] sm:$0xff] }
 0x8f2   : > { %v3957_v41 = vpop.f32.mrb[12].mxu0 }
 0x8f3   : > { %v2329_v42 = vpop.f32.mrb[13].mxu0 }
 0x924   : > { %v3971_v43 = vpop.f32.mrb[14].mxu0 }
 0x925   : > { %v2608_v44 = vmul.f32 0.35355338, %v3971_v43  ;;  %v2507_v45 = vpop.f32.mrb[15].mxu0  ;;  %v902_v43 = vld [vmem:[%s5486_s25 + $0x18] sm:$0xff] }
 0x926   : > { %v2607_v46 = vmul.f32 0.35355338, %v2507_v45 }
 0x927   : > { %v2614_v47 = vsel %vm1406_vm4, %v2608_v44, -inf }
 0x928   : > { %2615 = vmax.xlane.f32.xlu1 %v2614_v47  ;;  %v2611_v48 = vsel %vm1406_vm4, %v2607_v46, -inf }
 0x929   : > { %2612 = vmax.xlane.f32.xlu0 %v2611_v48 }
 0x92d   : > { %v5203_v50 = vpop.f32.mrb[20].mxu1 }
 0x92e   : > { %v5205_v49 = vpop.f32.mrb[21].mxu1 }
 0x935   : > { %v3978_v51 = vpop.f32.mrb[22].mxu1 }
 0x936   : > { %v2598_v52 = vpop.f32.mrb[23].mxu1  ;;  %v2610_v55 = vmul.f32 0.35355338, %v3978_v51 }
 0x937   : > { %v2609_v54 = vmul.f32 0.35355338, %v2598_v52 }
 0x938   : > { %v2620_v57 = vsel %vm1406_vm4, %v2610_v55, -inf }
 0x939   : > { %v2617_v56 = vsel %vm1406_vm4, %v2609_v54, -inf }
 0x93a   : > { %2618 = vmax.xlane.f32.xlu0 %v2617_v56 }
 0x93e   : > { %2621 = vmax.xlane.f32.xlu0 %v2620_v57 }
 0x9b5   : > { %v2616_v61 = vpop.xlane.xlu1 %2615 }
 0x9b6   : > { %v2624_v62 = vsub.f32 %v2608_v44, %v2616_v61  ;;  %v2613_v63 = vpop.xlane.xlu0 %2612 }
 0x9b7   : > { %v2623_v0 = vsub.f32 %v2607_v46, %v2613_v63 }
 0x9b8   : > { %v2629_v1 = vmul.f32 1.442695, %v2624_v62 }
 0x9b9   : > { %v2627_v53 = vmul.f32 1.442695, %v2623_v0 }
 0x9ba   : > { %4368 = vpow2.f32 %v2629_v1 }
 0x9bb   : > { %4370 = vpow2.f32 %v2627_v53 }
 0x9c4   : > { %v4369_v58 = vpop.eup %4368 }
 0x9c5   : > { %v4371_v2 = vpop.eup %4370  ;;  %v2638_v6 = vsel %vm1406_vm4, %v4369_v58, 0.0 }
 0x9c6   : > { %2639 = vadd.xlane.f32.xlu1 %v2638_v6  ;;  %v2635_v7 = vsel %vm1406_vm4, %v4371_v2, 0.0 }
 0x9c7   : > { %v2619_v9 = vpop.xlane.xlu0 %2618  ;;  %2636 = vadd.xlane.f32.xlu0 %v2635_v7 }
 0x9c8   : > { %v2625_v10 = vsub.f32 %v2609_v54, %v2619_v9 }
 0x9ca   : > { %v2631_v12 = vmul.f32 1.442695, %v2625_v10 }
 0x9cb   : > { %v2622_v13 = vpop.xlane.xlu0 %2621 }
 0x9cc   : > { %4372 = vpow2.f32 %v2631_v12  ;;  %v2626_v37 = vsub.f32 %v2610_v55, %v2622_v13 }
 0x9ce   : > { %v2633_v15 = vmul.f32 1.442695, %v2626_v37 }
 0x9d0   : > { %4374 = vpow2.f32 %v2633_v15  ;;  %v4400_v15 = vld [vmem:[#allocation2 + $0x8] sm:$0xff] }
 0x9d6   : > { %v4373_v16 = vpop.eup %4372 }
 0x9d7   : > { %v2641_v59 = vsel %vm1406_vm4, %v4373_v16, 0.0 }
 0x9d8   : > { %2642 = vadd.xlane.f32.xlu0 %v2641_v59  ;;  %v4401_v59 = vld [vmem:[#allocation2] sm:$0xff] }
 0x9da   : > { %v4375_v17 = vpop.eup %4374 }
 0x9db   : > { %v2644_v40 = vsel %vm1406_vm4, %v4375_v17, 0.0 }
 0x9dc   : > { %2645 = vadd.xlane.f32.xlu1 %v2644_v40 }
 0x9ed   : > { %4316 = vrot.lane.b32.xlu1 %v5066_v5, %s4602_s2 }
 0x9ee   : > { %4311 = vrot.lane.b32.xlu0 %v5061_v3, %s4602_s2 }
 0x9f1   : > { %2833 = vrot.lane.b32.xlu1 %v5155_v25, %s4603_s18 }
 0x9f2   : > { %2849 = vrot.lane.b32.xlu0 %v2329_v42, %s4604_s30  ;;  %v4147_v42 = vpack.c.bf16 %v900_v39, %v899_v38 }
 0x9f5   : > { %2835 = vrot.lane.b32.xlu1 %v5153_v24, %s4603_s18 }
 0x9f9   : > { %2851 = vrot.lane.b32.xlu1 %v3957_v41, %s4604_s30  ;;  %v901_v41 = vld [vmem:[%s5486_s25 + $0x10] sm:$0xff] }
 0x9fa   : > { %v4151_v44 = vpack.c.bf16 %v902_v43, %v901_v41 }
 0xa53   : > { %v2640_v19 = vpop.xlane.xlu1 %2639 }
 0xa54   : > { %v2637_v60 = vpop.xlane.xlu0 %2636 }
 0xa55   : > { %4376 = vrcp.f32 %v2637_v60 }
 0xa56   : > { %4378 = vrcp.f32 %v2640_v19 }
 0xa5f   : > { %v4377_v18 = vpop.eup %4376 }
 0xa60   : > { %v2651_v5 = vmul.f32 %v4377_v18, %v4371_v2  ;;  %v4379_v26 = vpop.eup %4378 }
 0xa61   : > { %v2652_v30 = vmul.f32 %v4379_v26, %v4369_v58 }
 0xa62   : > { %3983 = vmatprep.mubr.msk.f32.mxu0 %vm1406_vm4, %v2651_v5 }
 0xa65   : > { %v2643_v3 = vpop.xlane.xlu0 %2642 }
 0xa66   : > { %4380 = vrcp.f32 %v2643_v3 }
 0xa69   : > { %v2646_v20 = vpop.xlane.xlu1 %2645  ;;  %v4312_v25 = vpop.permute.xlu0 %4311 }
 0xa6a   : > { %4382 = vrcp.f32 %v2646_v20  ;;  %v4314_v21 = vunpack.i.h.bf16 %v4312_v25  ;;  %v4313_v22 = vunpack.i.l.bf16 %v4312_v25  ;;  %v4402_v20 = vld [vmem:[#allocation2 + $0x10] sm:$0xff] }
 0xa6c   : > { %v4139_v23 = vpack.c.bf16 %v4314_v21, %v4313_v22  ;;  %v4403_v22 = vld [vmem:[#allocation2 + $0x18] sm:$0xff] }
 0xa6d   : > { %v4317_v24 = vpop.permute.xlu1 %4316  ;;  %v2850_v55 = vpop.permute.xlu0 %2849 }
 0xa6e   : > { %v4319_v27 = vunpack.i.h.bf16 %v4317_v24  ;;  %v4318_v28 = vunpack.i.l.bf16 %v4317_v24  ;;  %4140 = vmatprep.subr.bf16.mxu0 %v4139_v23 }
 0xa6f   : > { %4142 = vmatpush3.bf16.msra.mxu0 %v4139_v23 }
 0xa70   : > { %v4381_v29 = vpop.eup %4380  ;;  %v4143_v31 = vpack.c.bf16 %v4319_v27, %v4318_v28  ;;  %4148 = vmatprep.subr.bf16.mxu0 %v4147_v42 }
 0xa71   : > { %v2653_v34 = vmul.f32 %v4381_v29, %v4373_v16  ;;  %v2834_v51 = vpop.permute.xlu1 %2833 }
 0xa72   : > { %3984 = vmatmul.mubr.msk.f32.vlgmr.msra.gmra.mrb[16].mxu0 %vm1406_vm4, %v2652_v30  ;;  %4144 = vmatprep.subr.bf16.mxu1 %v4143_v31  ;;  %v2877_v56 = vsel %vm1227_vm2, %v5107_v8, %v2834_v51 }
 0xa73   : > { %4146 = vmatpush3.bf16.msra.mxu1 %v4143_v31  ;;  %3990 = vmatprep.mubr.msk.f32.mxu1 %vm1406_vm4, %v2653_v34  ;;  %v2881_v57 = vsel %vm1406_vm4, %v2877_v56, %v2850_v55  ;;  %v909_v56 = vld [vmem:[%s4988_s12 + $0x10] sm:$0xff] }
 0xa74   : > { %v4383_v35 = vpop.eup %4382  ;;  %4150 = vmatpush3.bf16.msra.mxu0 %v4147_v42 }
 0xa75   : > { %v2654_v36 = vmul.f32 %v4383_v35, %v4375_v17  ;;  %4152 = vmatprep.subr.bf16.mxu0 %v4151_v44  ;;  %v2836_v52 = vpop.permute.xlu1 %2835 }
 0xa77   : > { %3991 = vmatmul.mubr.msk.f32.vlgmr.msra.gmra.mrb[24].mxu1 %vm1406_vm4, %v2654_v36 }
 0xa78   : > { %4154 = vmatpush3.bf16.msra.mxu0 %v4151_v44 }
 0xa79   : > { %v2852_v54 = vpop.permute.xlu1 %2851 }
 0xb45   : > { %v3985_v45 = vpop.f32.mrb[16].mxu0 }
 0xb46   : > { %2867 = vrot.lane.b32.xlu1 %v3985_v45, %s4605_s15  ;;  %v2733_v46 = vpop.f32.mrb[17].mxu0 }
 0xb47   : > { %2865 = vrot.lane.b32.xlu0 %v2733_v46, %s4605_s15 }
 0xb4a   : > { %v3992_v47 = vpop.f32.mrb[24].mxu1  ;;  %2839 = vrot.lane.b32.xlu1 %v5159_v32, %s4603_s18 }
 0xb4b   : > { %v2820_v48 = vpop.f32.mrb[25].mxu1  ;;  %2837 = vrot.lane.b32.xlu0 %v5161_v33, %s4603_s18  ;;  %v2878_v33 = vsel %vm1227_vm2, %v5105_v4, %v2836_v52  ;;  %v907_v52 = vld [vmem:[%s4988_s12] sm:$0xff] }
 0xb4c   : > { %v2882_v61 = vsel %vm1406_vm4, %v2878_v33, %v2852_v54  ;;  %v908_v54 = vld [vmem:[%s4988_s12 + $0x8] sm:$0xff] }
 0xb4d   : > { %v4155_v55 = vpack.c.bf16 %v908_v54, %v907_v52 }
 0xb4e   : > { %2855 = vrot.lane.b32.xlu1 %v5203_v50, %s4604_s30 }
 0xb4f   : > { %2853 = vrot.lane.b32.xlu0 %v5205_v49, %s4604_s30  ;;  %4156 = vmatprep.subr.bf16.mxu1 %v4155_v55 }
 0xb50   : > { %4158 = vmatpush3.bf16.msra.mxu1 %v4155_v55 }
 0xb52   : > { %2871 = vrot.lane.b32.xlu1 %v3992_v47, %s4605_s15 }
 0xb53   : > { %2869 = vrot.lane.b32.xlu0 %v2820_v48, %s4605_s15 }
 0xbb8   : > { %v2868_v32 = vpop.permute.xlu1 %2867 }
 0xbb9   : > { %v2866_v50 = vpop.permute.xlu0 %2865  ;;  %v2887_v62 = vsel %vm2885_vm5, %v2882_v61, %v2868_v32  ;;  %v910_v32 = vld [vmem:[%s4988_s12 + $0x18] sm:$0xff]  ;;  %v914_v61 = vld [vmem:[%s4966_s14 + $0x10] sm:$0xff] }
 0xbba   : > { %v2886_v49 = vsel %vm2885_vm5, %v2881_v57, %v2866_v50  ;;  %v4159_v33 = vpack.c.bf16 %v910_v32, %v909_v56  ;;  %v912_v57 = vld [vmem:[%s4966_s14] sm:$0xff]  ;;  %v913_v50 = vld [vmem:[%s4966_s14 + $0x8] sm:$0xff] }
 0xbbb   : > { %4001 = vmatprep.mubr.msk.f32.mxu0 %vm935_vm1, %v2886_v49  ;;  %v4163_v49 = vpack.c.bf16 %v913_v50, %v912_v57 }
 0xbbc   : > { %v2840_v63 = vpop.permute.xlu1 %2839  ;;  %4002 = vmatmul.mubr.msk.f32.vlgmr.msra.gmra.mrb[18].mxu0 %vm935_vm1, %v2887_v62  ;;  %4160 = vmatprep.subr.bf16.mxu1 %v4159_v33  ;;  %v915_v62 = vld [vmem:[%s4966_s14 + $0x18] sm:$0xff] }
 0xbbd   : > { %v2838_v8 = vpop.permute.xlu0 %2837  ;;  %v2880_v58 = vsel %vm1227_vm2, %v5109_v11, %v2840_v63  ;;  %4162 = vmatpush3.bf16.msra.mxu1 %v4159_v33  ;;  %v4167_v63 = vpack.c.bf16 %v915_v62, %v914_v61  ;;  %4164 = vmatprep.subr.bf16.mxu0 %v4163_v49 }
 0xbbe   : > { %v2879_v4 = vsel %vm1227_vm2, %v5111_v14, %v2838_v8  ;;  %v3693_v14 = vld [vmem:[%s5488_s3] ss:$0 sm:$0xff]  ;;  %4166 = vmatpush3.bf16.msra.mxu0 %v4163_v49 }
 0xbbf   : > { %v916_v8 = vld [vmem:[%s4966_s14 + $0x20] sm:$0xff]  ;;  %4168 = vmatprep.subr.bf16.mxu0 %v4167_v63 }
 0xbc0   : > { %v2856_v0 = vpop.permute.xlu1 %2855 }
 0xbc1   : > { %v2854_v1 = vpop.permute.xlu0 %2853  ;;  %v2884_v7 = vsel %vm1406_vm4, %v2880_v58, %v2856_v0  ;;  %v917_v0 = vld [vmem:[%s4966_s14 + $0x28] sm:$0xff] }
 0xbc2   : > { %v2883_v2 = vsel %vm1406_vm4, %v2879_v4, %v2854_v1  ;;  %v4171_v1 = vpack.c.bf16 %v917_v0, %v916_v8  ;;  %4170 = vmatpush3.bf16.msra.mxu0 %v4167_v63 }
 0xbc4   : > { %v2872_v53 = vpop.permute.xlu1 %2871  ;;  %4172 = vmatprep.subr.bf16.mxu0 %v4171_v1 }
 0xbc5   : > { %v2870_v6 = vpop.permute.xlu0 %2869  ;;  %v2889_v10 = vsel %vm2885_vm5, %v2884_v7, %v2872_v53 }
 0xbc6   : > { %v2888_v9 = vsel %vm2885_vm5, %v2883_v2, %v2870_v6  ;;  %4174 = vmatpush3.bf16.msra.mxu0 %v4171_v1 }
 0xbc7   : > { %4004 = vmatprep.mubr.msk.f32.mxu0 %vm935_vm1, %v2888_v9 }
 0xbc8   : > { %4005 = vmatmul.mubr.msk.f32.gmra.mrb[20].mxu0 %vm935_vm1, %v2889_v10 }
 0xc8f   : > { %v4003_v12 = vpop.f32.mrb[18].mxu0 }
 0xc90   : > { %v2980_v11 = vadd.f32 %v4003_v12, %v3693_v14  ;;  %v2974_v13 = vpop.f32.mrb[19].mxu0  ;;  %v3698_v12 = vld [vmem:[%s856_s28] ss:$0 sm:$0xff] }
 0xc91   : > { %v2975_v37 = vadd.f32 %v3693_v14, %v2974_v13 }
 0xc92   : > { %v2994_v16 = vadd.f32 %v4400_v15, %v2980_v11 }
 0xc93   : > { %v2993_v17 = vadd.f32 %v4401_v59, %v2975_v37 }
 0xc94   : > { %v3000_v40 = vsel %vm935_vm1, %v2994_v16, 0.0 }
 0xc95   : > { %3001 = vadd.xlane.f32.xlu1 %v3000_v40  ;;  %v2997_v60 = vsel %vm935_vm1, %v2993_v17, 0.0 }
 0xc96   : > { %2998 = vadd.xlane.f32.xlu0 %v2997_v60 }
 0xc9b   : > { %v4006_v18 = vpop.f32.mrb[20].mxu0 }
 0xc9c   : > { %v2984_v19 = vpop.f32.mrb[21].mxu0  ;;  %v2990_v5 = vadd.f32 %v4006_v18, %v3693_v14 }
 0xc9d   : > { %v2985_v3 = vadd.f32 %v3693_v14, %v2984_v19 }
 0xc9e   : > { %v2996_v23 = vadd.f32 %v4403_v22, %v2990_v5 }
 0xc9f   : > { %v2995_v25 = vadd.f32 %v4402_v20, %v2985_v3 }
 0xca0   : > { %v3006_v26 = vsel %vm935_vm1, %v2996_v23, 0.0 }
 0xca1   : > { %v3003_v21 = vsel %vm935_vm1, %v2995_v25, 0.0 }
 0xca2   : > { %3004 = vadd.xlane.f32.xlu0 %v3003_v21 }
 0xca6   : > { %3007 = vadd.xlane.f32.xlu0 %v3006_v26 }
 0xd22   : > { %v3002_v24 = vpop.xlane.xlu1 %3001 }
 0xd23   : > { %v3011_v27 = vmul.f32 0.03125, %v3002_v24  ;;  %v2999_v28 = vpop.xlane.xlu0 %2998 }
 0xd24   : > { %v3010_v29 = vmul.f32 0.03125, %v2999_v28  ;;  %v919_v28 = vld [vmem:[%s4966_s14 + $0x38] sm:$0xff] }
 0xd25   : > { %v3015_v30 = vsub.f32 %v2994_v16, %v3011_v27  ;;  %v918_v27 = vld [vmem:[%s4966_s14 + $0x30] sm:$0xff] }
 0xd26   : > { %v3014_v31 = vsub.f32 %v2993_v17, %v3010_v29  ;;  %v3699_v17 = vld [vmem:[%s859_s9] ss:$0 sm:$0xff]  ;;  %v4175_v29 = vpack.c.bf16 %v919_v28, %v918_v27 }
 0xd27   : > { %v3019_v34 = vmul.f32 %v3015_v30, %v3015_v30 }
 0xd28   : > { %v3018_v35 = vmul.f32 %v3014_v31, %v3014_v31  ;;  %4176 = vmatprep.subr.bf16.mxu0 %v4175_v29 }
 0xd29   : > { %v3025_v36 = vsel %vm935_vm1, %v3019_v34, 0.0  ;;  %4178 = vmatpush3.bf16.msra.mxu0 %v4175_v29  ;;  %v3711_v29 = vld [vmem:[%s865_s26] ss:$0 sm:$0xff] }
 0xd2a   : > { %3026 = vadd.xlane.f32.xlu1 %v3025_v36  ;;  %v3022_v38 = vsel %vm935_vm1, %v3018_v35, 0.0 }
 0xd2b   : > { %3023 = vadd.xlane.f32.xlu0 %v3022_v38 }
 0xd2f   : > { %v3005_v39 = vpop.xlane.xlu0 %3004 }
 0xd30   : > { %v3012_v41 = vmul.f32 0.03125, %v3005_v39 }
 0xd32   : > { %v5270_v42 = vsub.f32 %v2995_v25, %v3012_v41 }
 0xd33   : > { %v3008_v43 = vpop.xlane.xlu0 %3007 }
 0xd34   : > { %v3013_v44 = vmul.f32 0.03125, %v3008_v43  ;;  %v3020_v45 = vmul.f32 %v5270_v42, %v5270_v42 }
 0xd36   : > { %v5274_v46 = vsub.f32 %v2996_v23, %v3013_v44  ;;  %v3028_v47 = vsel %vm935_vm1, %v3020_v45, 0.0 }
 0xd37   : > { %3029 = vadd.xlane.f32.xlu0 %v3028_v47  ;;  %v3705_v47 = vld [vmem:[%s853_s4] ss:$0 sm:$0xff] }
 0xd38   : > { %v3021_v48 = vmul.f32 %v5274_v46, %v5274_v46 }
 0xd3a   : > { %v3031_v51 = vsel %vm935_vm1, %v3021_v48, 0.0 }
 0xd3b   : > { %3032 = vadd.xlane.f32.xlu1 %v3031_v51 }
 0xdb7   : > { %v3027_v4 = vpop.xlane.xlu1 %3026 }
 0xdb8   : > { %v3035_v53 = vmul.f32 0.03125, %v3027_v4  ;;  %v3024_v58 = vpop.xlane.xlu0 %3023 }
 0xdb9   : > { %v3034_v2 = vmul.f32 0.03125, %v3024_v58 }
 0xdba   : > { %v3039_v6 = vadd.f32 1e-05, %v3035_v53 }
 0xdbb   : > { %v3038_v7 = vadd.f32 1e-05, %v3034_v2 }
 0xdbc   : > { %4384 = vrsqrt.f32 %v3039_v6 }
 0xdbd   : > { %4386 = vrsqrt.f32 %v3038_v7 }
 0xdc4   : > { %v3030_v9 = vpop.xlane.xlu0 %3029 }
 0xdc5   : > { %v3036_v10 = vmul.f32 0.03125, %v3030_v9 }
 0xdc6   : > { %v4385_v14 = vpop.eup %4384 }
 0xdc7   : > { %v4387_v11 = vpop.eup %4386  ;;  %v3047_v13 = vmul.f32 %v4385_v14, %v3015_v30  ;;  %v3040_v37 = vadd.f32 1e-05, %v3036_v10  ;;  %v3700_v30 = vld [vmem:[%s5492_s20] ss:$0 sm:$0xff] }
 0xdc8   : > { %v3033_v15 = vpop.xlane.xlu1 %3032  ;;  %v3046_v16 = vmul.f32 %v4387_v11, %v3014_v31 }
 0xdc9   : > { %4388 = vrsqrt.f32 %v3040_v37  ;;  %v3037_v59 = vmul.f32 0.03125, %v3033_v15  ;;  %v3057_v40 = vmul.f32 %v3698_v12, %v3047_v13 }
 0xdca   : > { %v3056_v60 = vmul.f32 %v3698_v12, %v3046_v16 }
 0xdcb   : > { %v3041_v18 = vadd.f32 1e-05, %v3037_v59  ;;  %v3067_v5 = vadd.f32 %v3699_v17, %v3057_v40 }
 0xdcc   : > { %v3066_v19 = vadd.f32 %v3699_v17, %v3056_v60 }
 0xdcd   : > { %4390 = vrsqrt.f32 %v3041_v18 }
 0xdce   : > { %4015 = vmatprep.mubr.msk.f32.mxu1 %vm935_vm1, %v3066_v19 }
 0xdcf   : > { %4016 = vmatmul.mubr.msk.f32.vlgmr.msra.gmra.mrb[26].mxu1 %vm935_vm1, %v3067_v5 }
 0xdd3   : > { %v4389_v3 = vpop.eup %4388 }
 0xdd4   : > { %v3048_v20 = vmul.f32 %v4389_v3, %v5270_v42 }
 0xdd6   : > { %v3058_v25 = vmul.f32 %v3698_v12, %v3048_v20 }
 0xdd7   : > { %v4391_v21 = vpop.eup %4390 }
 0xdd8   : > { %v3068_v22 = vadd.f32 %v3699_v17, %v3058_v25  ;;  %v3049_v23 = vmul.f32 %v4391_v21, %v5274_v46 }
 0xdda   : > { %4018 = vmatprep.mubr.msk.f32.mxu1 %vm935_vm1, %v3068_v22  ;;  %v3059_v26 = vmul.f32 %v3698_v12, %v3049_v23 }
 0xddc   : > { %v3069_v24 = vadd.f32 %v3699_v17, %v3059_v26 }
 0xdde   : > { %4019 = vmatmul.mubr.msk.f32.gmra.mrb[28].mxu1 %vm935_vm1, %v3069_v24 }
 0xea2   : > { %v4017_v31 = vpop.f32.mrb[26].mxu1 }
 0xea3   : > { %v3160_v34 = vadd.f32 %v4017_v31, %v3700_v30  ;;  %v3154_v35 = vpop.f32.mrb[27].mxu1 }
 0xea4   : > { %v3155_v36 = vadd.f32 %v3700_v30, %v3154_v35 }
 0xea5   : > { %v3174_v39 = vmax.f32 %v3160_v34, 0.0 }
 0xea6   : > { %v3173_v38 = vmax.f32 %v3155_v36, 0.0 }
 0xea8   : > { %4037 = vmatprep.mubr.msk.f32.mxu0 %vm3183_vm6, %v3173_v38 }
 0xea9   : > { %4038 = vmatmul.mubr.msk.f32.vlgmr.msra.gmra.mrb[22].mxu0 %vm3183_vm6, %v3174_v39 }
 0xeb1   : > { %v4020_v41 = vpop.f32.mrb[28].mxu1 }
 0xeb2   : > { %v3170_v42 = vadd.f32 %v4020_v41, %v3700_v30  ;;  %v3164_v43 = vpop.f32.mrb[29].mxu1 }
 0xeb3   : > { %v3165_v44 = vadd.f32 %v3700_v30, %v3164_v43 }
 0xeb4   : > { %v3176_v46 = vmax.f32 %v3170_v42, 0.0 }
 0xeb5   : > { %v3175_v45 = vmax.f32 %v3165_v44, 0.0 }
 0xeb7   : > { %4040 = vmatprep.mubr.msk.f32.mxu0 %vm3183_vm6, %v3175_v45 }
 0xeb8   : > { %4041 = vmatmul.mubr.msk.f32.gmra.mrb[24].mxu0 %vm3183_vm6, %v3176_v46 }
 0xf7c   : > { %v4039_v48 = vpop.f32.mrb[22].mxu0 }
 0xf7d   : > { %v3268_v51 = vadd.f32 %v4039_v48, %v3705_v47  ;;  %v3262_v52 = vpop.f32.mrb[23].mxu0 }
 0xf7e   : > { %v3263_v54 = vadd.f32 %v3705_v47, %v3262_v52 }
 0xf7f   : > { %v3282_v55 = vadd.f32 %v3268_v51, %v3067_v5 }
 0xf80   : > { %v3281_v56 = vadd.f32 %v3263_v54, %v3066_v19 }
 0xf81   : > { %v3288_v32 = vsel %vm935_vm1, %v3282_v55, 0.0 }
 0xf82   : > { %3289 = vadd.xlane.f32.xlu1 %v3288_v32  ;;  %v3285_v33 = vsel %vm935_vm1, %v3281_v56, 0.0 }
 0xf83   : > { %3286 = vadd.xlane.f32.xlu0 %v3285_v33 }
 0xf8b   : > { %v4042_v57 = vpop.f32.mrb[24].mxu0 }
 0xf8c   : > { %v3278_v50 = vadd.f32 %v4042_v57, %v3705_v47  ;;  %v3272_v61 = vpop.f32.mrb[25].mxu0 }
 0xf8d   : > { %v3273_v49 = vadd.f32 %v3705_v47, %v3272_v61 }
 0xf8e   : > { %v3284_v62 = vadd.f32 %v3278_v50, %v3069_v24 }
 0xf8f   : > { %v3283_v63 = vadd.f32 %v3273_v49, %v3068_v22  ;;  %v3710_v22 = vld [vmem:[%s862_s11] ss:$0 sm:$0xff] }
 0xf90   : > { %v3294_v8 = vsel %vm935_vm1, %v3284_v62, 0.0 }
 0xf91   : > { %3295 = vadd.xlane.f32.xlu1 %v3294_v8  ;;  %v3291_v0 = vsel %vm935_vm1, %v3283_v63, 0.0 }
 0xf92   : > { %3292 = vadd.xlane.f32.xlu0 %v3291_v0 }
0x100f   : > { %v3290_v1 = vpop.xlane.xlu1 %3289 }
0x1010   : > { %v3298_v4 = vmul.f32 0.03125, %v3290_v1  ;;  %v3287_v53 = vpop.xlane.xlu0 %3286 }
0x1011   : > { %v3297_v58 = vmul.f32 0.03125, %v3287_v53 }
0x1012   : > { %v3302_v2 = vsub.f32 %v3282_v55, %v3298_v4 }
0x1013   : > { %v3301_v6 = vsub.f32 %v3281_v56, %v3297_v58 }
0x1014   : > { %v3306_v7 = vmul.f32 %v3302_v2, %v3302_v2 }
0x1015   : > { %v3305_v9 = vmul.f32 %v3301_v6, %v3301_v6 }
0x1016   : > { %v3312_v10 = vsel %vm935_vm1, %v3306_v7, 0.0 }
0x1017   : > { %3313 = vadd.xlane.f32.xlu1 %v3312_v10  ;;  %v3309_v14 = vsel %vm935_vm1, %v3305_v9, 0.0 }
0x1018   : > { %3310 = vadd.xlane.f32.xlu0 %v3309_v14 }
0x101e   : > { %v3296_v12 = vpop.xlane.xlu1 %3295 }
0x101f   : > { %v3300_v11 = vmul.f32 0.03125, %v3296_v12  ;;  %v3293_v13 = vpop.xlane.xlu0 %3292 }
0x1020   : > { %v3299_v37 = vmul.f32 0.03125, %v3293_v13 }
0x1021   : > { %v3304_v15 = vsub.f32 %v3284_v62, %v3300_v11 }
0x1022   : > { %v3303_v16 = vsub.f32 %v3283_v63, %v3299_v37 }
0x1023   : > { %v3308_v59 = vmul.f32 %v3304_v15, %v3304_v15 }
0x1024   : > { %v3307_v17 = vmul.f32 %v3303_v16, %v3303_v16 }
0x1025   : > { %v3318_v40 = vsel %vm935_vm1, %v3308_v59, 0.0 }
0x1026   : > { %3319 = vadd.xlane.f32.xlu1 %v3318_v40  ;;  %v3315_v60 = vsel %vm935_vm1, %v3307_v17, 0.0 }
0x1027   : > { %3316 = vadd.xlane.f32.xlu0 %v3315_v60 }
0x10a4   : > { %v3314_v18 = vpop.xlane.xlu1 %3313 }
0x10a5   : > { %v3322_v19 = vmul.f32 0.03125, %v3314_v18  ;;  %v3311_v5 = vpop.xlane.xlu0 %3310 }
0x10a6   : > { %v3321_v3 = vmul.f32 0.03125, %v3311_v5 }
0x10a7   : > { %v3326_v20 = vadd.f32 1e-05, %v3322_v19 }
0x10a8   : > { %v3325_v25 = vadd.f32 1e-05, %v3321_v3 }
0x10a9   : > { %4392 = vrsqrt.f32 %v3326_v20 }
0x10aa   : > { %4394 = vrsqrt.f32 %v3325_v25 }
0x10b3   : > { %v4393_v21 = vpop.eup %4392  ;;  %v3320_v23 = vpop.xlane.xlu1 %3319 }
0x10b4   : > { %v4395_v26 = vpop.eup %4394  ;;  %v3334_v24 = vmul.f32 %v4393_v21, %v3302_v2  ;;  %v3324_v27 = vmul.f32 0.03125, %v3320_v23  ;;  %v3317_v28 = vpop.xlane.xlu0 %3316 }
0x10b5   : > { %v3333_v30 = vmul.f32 %v4395_v26, %v3301_v6  ;;  %v3323_v31 = vmul.f32 0.03125, %v3317_v28 }
0x10b6   : > { %v3344_v34 = vmul.f32 %v3710_v22, %v3334_v24  ;;  %v3328_v35 = vadd.f32 1e-05, %v3324_v27 }
0x10b7   : > { %v3343_v36 = vmul.f32 %v3710_v22, %v3333_v30  ;;  %v3327_v38 = vadd.f32 1e-05, %v3323_v31 }
0x10b8   : > { %v3354_v39 = vadd.f32 %v3711_v29, %v3344_v34  ;;  %4396 = vrsqrt.f32 %v3328_v35 }
0x10b9   : > { %v3353_v41 = vadd.f32 %v3711_v29, %v3343_v36  ;;  %4398 = vrsqrt.f32 %v3327_v38 }
0x10ba   : > { %3358 = vst.msk [vmem:[#allocation2 + $0x8] sm:$0xff] %vm935_vm1, %v3354_v39  ;;  %3366 = vst.msk [vmem:[#allocation10 + $0x8] sm:$0xff] (!%p3712_p0), %vm935_vm1, %v3354_v39 }
0x10bb   : > { %3357 = vst.msk [vmem:[#allocation2] sm:$0xff] %vm935_vm1, %v3353_v41  ;;  %3365 = vst.msk [vmem:[#allocation10] sm:$0xff] (!%p3712_p0), %vm935_vm1, %v3353_v41 }
0x10c2   : > { %v4397_v42 = vpop.eup %4396 }
0x10c3   : > { %v4399_v43 = vpop.eup %4398  ;;  %v3336_v44 = vmul.f32 %v4397_v42, %v3304_v15 }
0x10c4   : > { %v3335_v45 = vmul.f32 %v4399_v43, %v3303_v16  ;;  %3364 = sbr.rel (%p3712_p0) target bundleno = 4299 (0x10cb), region = 116 }
0x10c5   : > { %v3346_v46 = vmul.f32 %v3710_v22, %v3336_v44 }
0x10c6   : > { %v3345_v47 = vmul.f32 %v3710_v22, %v3335_v45 }
0x10c7   : > { %v3356_v48 = vadd.f32 %v3711_v29, %v3346_v46 }
0x10c8   : > { %v3355_v51 = vadd.f32 %v3711_v29, %v3345_v47 }
0x10c9   : > { %3360 = vst.msk [vmem:[#allocation2 + $0x18] sm:$0xff] %vm935_vm1, %v3356_v48  ;;  %3368 = vst.msk [vmem:[#allocation10 + $0x18] sm:$0xff] (!%p3712_p0), %vm935_vm1, %v3356_v48 }
0x10ca   : > { %3359 = vst.msk [vmem:[#allocation2 + $0x10] sm:$0xff] %vm935_vm1, %v3355_v51  ;;  %3367 = vst.msk [vmem:[#allocation10 + $0x10] sm:$0xff] (!%p3712_p0), %vm935_vm1, %v3355_v51 }
0x10cb PF: > { %p4214_p8 = scmp.eq.s32.totalorder %s4722_s0, 1  ;;  %s4606_s11 = smov [#allocation10]  }
0x10cc   : > { %s3375_s24 = sshll.u32 %s4606_s11, 4  ;;  %s3376_s24 = int_to_ptr.vmem [resolvable:$true] %s3375_s24 }
0x10cd   : > { %s4520_s26 = scalar_lea.vmem %s3376_s24, 512  ;;  %p4527_p11 = scmp.lt.s32.totalorder %s3376_s24, %s3376_s24 }
0x10ce   : > { %p4521_p2 = scmp.ne.s32.totalorder %s3376_s24, %s4520_s26  ;;  %p4528_p12 = scmp.lt.s32.totalorder %s4520_s26, %s4520_s26 }
0x10d0   : > { %p4522_p4 = pnand %p4521_p2, %p4214_p8  ;;  %p4529_p13 = por %p4528_p12, %p4527_p11 }
0x10d2   : > { %p4523_p7 = pneg %p4522_p4 }
0x10d4   : > { %p4530_p5 = pnand %p4529_p13, %p4523_p7 }
0x10d6   : > { %4533 = shalt.err (!%p4530_p5)
}
0x10d7   : > { %s5496_s10 = sld [smem:[#allocation35_spill]] }
0x10dd   : > { %s4534_s3 = scalar_lea.hbm %s5496_s10, 512 }
0x10de   : > { %p4535_p10 = scmp.ne.s32.totalorder %s5496_s10, %s4534_s3  ;;  %p4540_p3 = scmp.lt.u32.totalorder %s4534_s3, %s5496_s10 }
0x10e0   : > { %p4536_p1 = pnand %p4535_p10, %p4214_p8 }
0x10e2   : > { %p4537_p9 = pneg %p4536_p1 }
0x10e4   : > { %p4542_p6 = pnand %p4540_p3, %p4537_p9 }
0x10e6   : > { %4545 = shalt.err (!%p4542_p6)
}
0x10e7   : > { %s4607_s17 = smov 128  }
0x10e8   : > { %4192 = dma.vmem_to_hbm [thread:$0]  (%p4214_p8), %s3376_s24, 512, %s5496_s10, [#allocation5], %s4607_s17, %s4607_s17, %s4603_s18  }
0x10e9   : > { %4575 = dma.done.wait (%p4214_p8), [#allocation5], 512  }
0x10ea   : > { %4577 = vsyncadd (%p4214_p8), [#allocation5], 4294966784 }
0x10eb PF: > { %s5497_s30 = sld [smem:[#allocation17_spill]]  ;;  %s5498_s27 = sld [smem:[#allocation15_spill]] }
0x10ec   : > { %s5499_s28 = sld [smem:[#allocation16_spill]]  ;;  %s5500_s29 = sld [smem:[#allocation18_spill]] }
0x10f1   : > { %p28_p0 = scmp.ge.s32.totalorder %s5497_s30, 4  }
0x10f3   :  { %30 = sbr.rel (!%p28_p0) target bundleno = 21 (0x15), region = 197 }
0x10fa   :  { %3391 = vsyncpa [#allocation4], 1 }
0x10fb   :  { %3393 = vsyncpa [#allocation4 + $0x1], 1 }
0x10fc   :  { %3394 = vsyncpa [#allocation7], 1 }
0x10fd   :  { %3395 = vsyncpa [#allocation5], 1 }
0x10fe   :  { %3397 = vsyncpa [#allocation5 + $0x1], 1 }

</bundles_post_ra>
